<compile_context>
chip_gen: v6e
topology: v6e:2x2x1
jax: 0.10.0
libtpu: 0.0.40
codegen_flags: <defaults>
</compile_context>

<pallas_src>
import functools

import jax
import jax.numpy as jnp
from jax import lax
from jax.experimental import pallas as pl
from jax.experimental.pallas import tpu as pltpu


_VMEM_LIMIT = 48 * 1024 * 1024   # explicit scoped-VMEM budget (< v7x 64 MiB physical)


# ------------------------------ tiling helpers -------------------------------

def _row_tile(m):
    """Row (sublane) tile: 256 for large M (edge gets zero-padded), else M rounded to 8."""
    if m >= 256:
        return 256
    return ((m + 7) // 8) * 8


def _pad_rows(x, tile):
    """Zero-pad the row axis only (never D/K -> LN stats and contractions stay exact)."""
    m = x.shape[0]
    mp = ((m + tile - 1) // tile) * tile
    if mp != m:
        x = jnp.pad(x, ((0, mp - m), (0, 0)))
    return x, m


# --------------------- fused LayerNorm + Linear (+QuickGELU) -----------------

def _ln_linear_kernel(*refs, eps, activation, has_bias):
    # y = LN(x) @ W (+ b), optional QuickGELU.  Full-N output block => LN runs
    # exactly once per row and the output store is lane-dense.  LN math in f32.
    x_ref, g_ref, bln_ref, w_ref = refs[:4]
    idx = 4
    b_ref = refs[idx] if has_bias else None
    idx += int(has_bias)
    o_ref = refs[idx]

    x = x_ref[...].astype(jnp.float32)
    mean = jnp.mean(x, axis=-1, keepdims=True)
    xc = x - mean
    var = jnp.mean(xc * xc, axis=-1, keepdims=True)
    xn = xc * lax.rsqrt(var + eps)
    xn = xn * g_ref[...].astype(jnp.float32) + bln_ref[...].astype(jnp.float32)

    acc = jnp.dot(xn.astype(w_ref.dtype), w_ref[...],
                  preferred_element_type=jnp.float32)
    if has_bias:
        acc = acc + b_ref[...].astype(jnp.float32)
    if activation == "quickgelu":
        acc = acc * jax.nn.sigmoid(1.702 * acc)
    o_ref[...] = acc.astype(o_ref.dtype)


def ln_linear(x, g, b_ln, w, b=None, activation=None, eps=1e-5):
    M, D = x.shape
    D2, N = w.shape
    assert D == D2
    tm = _row_tile(M)
    xp, m0 = _pad_rows(x, tm)
    Mp = xp.shape[0]
    has_bias = b is not None

    operands = [xp, g.reshape(1, D), b_ln.reshape(1, D), w]
    in_specs = [
        pl.BlockSpec((tm, D), lambda i: (i, 0)),
        pl.BlockSpec((1, D), lambda i: (0, 0)),
        pl.BlockSpec((1, D), lambda i: (0, 0)),
        pl.BlockSpec((D, N), lambda i: (0, 0)),   # full-N weight: streamed once
    ]
    if has_bias:
        operands.append(b.reshape(1, N))
        in_specs.append(pl.BlockSpec((1, N), lambda i: (0, 0)))

    out = pl.pallas_call(
        functools.partial(_ln_linear_kernel, eps=eps, activation=activation,
                          has_bias=has_bias),
        out_shape=jax.ShapeDtypeStruct((Mp, N), x.dtype),
        grid=(Mp // tm,),
        in_specs=in_specs,
        out_specs=pl.BlockSpec((tm, N), lambda i: (i, 0)),
        compiler_params=pltpu.CompilerParams(
            dimension_semantics=("parallel",),
            vmem_limit_bytes=_VMEM_LIMIT),
    )(*operands)
    return out[:m0] if Mp != m0 else out


# ---------- fused MLP block: LN2 -> FC -> QuickGELU -> Proj -> +residual -----

def _mlp_block_kernel(x_ref, g_ref, bln_ref, w1_ref, b1_ref, w2_ref, b2_ref,
                      o_ref, h_ref, *, eps):
    # out = x + ( QuickGELU( LN(x) @ W_fc + b_fc ) @ W_proj + b_proj )
    # The 4D hidden lives only in the VMEM scratch h_ref (weight dtype) -> no HBM trip.
    x = x_ref[...].astype(jnp.float32)
    mean = jnp.mean(x, axis=-1, keepdims=True)
    xc = x - mean
    var = jnp.mean(xc * xc, axis=-1, keepdims=True)
    xn = xc * lax.rsqrt(var + eps)
    xn = xn * g_ref[...].astype(jnp.float32) + bln_ref[...].astype(jnp.float32)

    h = jnp.dot(xn.astype(w1_ref.dtype), w1_ref[...],
                preferred_element_type=jnp.float32)
    h = h + b1_ref[...].astype(jnp.float32)
    h = h * jax.nn.sigmoid(1.702 * h)                 # QuickGELU (f32, EUP)
    h_ref[...] = h.astype(h_ref.dtype)

    out = jnp.dot(h_ref[...], w2_ref[...], preferred_element_type=jnp.float32)
    out = out + b2_ref[...].astype(jnp.float32) + x   # residual fused (pre-LN x)
    o_ref[...] = out.astype(o_ref.dtype)


def mlp_block(x, g, b_ln, w_fc, b_fc, w_proj, b_proj, eps=1e-5):
    M, D = x.shape
    Dh = w_fc.shape[1]
    tm = _row_tile(M)
    xp, m0 = _pad_rows(x, tm)
    Mp = xp.shape[0]

    out = pl.pallas_call(
        functools.partial(_mlp_block_kernel, eps=eps),
        out_shape=jax.ShapeDtypeStruct((Mp, D), x.dtype),
        grid=(Mp // tm,),
        in_specs=[
            pl.BlockSpec((tm, D), lambda i: (i, 0)),
            pl.BlockSpec((1, D), lambda i: (0, 0)),
            pl.BlockSpec((1, D), lambda i: (0, 0)),
            pl.BlockSpec((D, Dh), lambda i: (0, 0)),
            pl.BlockSpec((1, Dh), lambda i: (0, 0)),
            pl.BlockSpec((Dh, D), lambda i: (0, 0)),
            pl.BlockSpec((1, D), lambda i: (0, 0)),
        ],
        out_specs=pl.BlockSpec((tm, D), lambda i: (i, 0)),
        scratch_shapes=[pltpu.VMEM((tm, Dh), w_proj.dtype)],   # hidden in weight dtype
        compiler_params=pltpu.CompilerParams(
            dimension_semantics=("parallel",),
            vmem_limit_bytes=_VMEM_LIMIT),
    )(xp, g.reshape(1, D), b_ln.reshape(1, D), w_fc, b_fc.reshape(1, Dh),
      w_proj, b_proj.reshape(1, D))
    return out[:m0] if Mp != m0 else out


# --------- fused multi-head attention + output proj + residual add -----------

def _attn_block_kernel(qkv_ref, wo_ref, bo_ref, res_ref, o_ref, ctx_ref,
                       *, num_heads, scale):
    L = qkv_ref.shape[1]
    D = qkv_ref.shape[2] // 3
    dh = D // num_heads

    # causal mask generated in-kernel: no (L, L) operand DMA
    rows = lax.broadcasted_iota(jnp.int32, (L, L), 0)
    cols = lax.broadcasted_iota(jnp.int32, (L, L), 1)
    causal = cols <= rows

    # per-head softmax(q k^T) @ v written into the (L, D) VMEM ctx scratch;
    # the output projection is a single K=D matmul afterwards (full MXU depth).
    for h in range(num_heads):                        # static unroll, H is small
        q = qkv_ref[0, :, h * dh:(h + 1) * dh].astype(jnp.float32) * scale
        k = qkv_ref[0, :, D + h * dh:D + (h + 1) * dh].astype(jnp.float32)
        v = qkv_ref[0, :, 2 * D + h * dh:2 * D + (h + 1) * dh].astype(jnp.float32)

        # q @ k^T without materializing a transpose
        s = lax.dot_general(q, k, (((1,), (1,)), ((), ())),
                            preferred_element_type=jnp.float32)   # (L, L)
        s = jnp.where(causal, s, -1e30)
        s = s - jnp.max(s, axis=-1, keepdims=True)
        p = jnp.exp(s)
        p = p * pl.reciprocal(jnp.sum(p, axis=-1, keepdims=True), approx=True)

        head = jnp.dot(p, v, preferred_element_type=jnp.float32)  # (L, dh)
        ctx_ref[:, h * dh:(h + 1) * dh] = head.astype(ctx_ref.dtype)

    out = jnp.dot(ctx_ref[...], wo_ref[...],
                  preferred_element_type=jnp.float32)              # ONE K=D matmul
    out = out + bo_ref[...].astype(jnp.float32) + res_ref[0].astype(jnp.float32)
    o_ref[0] = out.astype(o_ref.dtype)


def attention_block(qkv, w_out, b_out, x_res, *, num_heads, scale):
    Nb, L, D3 = qkv.shape
    D = D3 // 3
    # TODO(synk): for v7x, add a head/q-tile grid axis (ctx scratch + pl.when finalize)
    # so both TensorCores are used when Nb is small; needs 128-lane-padded head layout.
    return pl.pallas_call(
        functools.partial(_attn_block_kernel, num_heads=num_heads, scale=scale),
        out_shape=jax.ShapeDtypeStruct((Nb, L, D), x_res.dtype),
        grid=(Nb,),
        in_specs=[
            pl.BlockSpec((1, L, D3), lambda b: (b, 0, 0)),
            pl.BlockSpec((D, D), lambda b: (0, 0)),
            pl.BlockSpec((1, D), lambda b: (0, 0)),
            pl.BlockSpec((1, L, D), lambda b: (b, 0, 0)),
        ],
        out_specs=pl.BlockSpec((1, L, D), lambda b: (b, 0, 0)),
        scratch_shapes=[pltpu.VMEM((L, D), w_out.dtype)],   # ctx accumulator in VMEM
        compiler_params=pltpu.CompilerParams(
            dimension_semantics=("parallel",),
            vmem_limit_bytes=_VMEM_LIMIT),
    )(qkv, w_out, b_out.reshape(1, D), x_res)


# ------------------------- synthetic CLIP parameters -------------------------

def init_params(key, *, depth, D, H, L, proj_dim, dtype=jnp.bfloat16):
    ks = iter(jax.random.split(key, 6 + 12 * depth))
    nrm = lambda shape: 0.02 * jax.random.normal(next(ks), shape, dtype=dtype)

    params = {
        "pos_emb": nrm((L, D)),
        "lnf_g": jnp.ones((D,), dtype),
        "lnf_b": jnp.zeros((D,), dtype),
        "text_projection": nrm((D, proj_dim)),
        "layers": [],
    }
    for _ in range(depth):
        layer = {
            "ln1_g": jnp.ones((D,), dtype), "ln1_b": jnp.zeros((D,), dtype),
            "w_qkv": nrm((D, 3 * D)), "b_qkv": nrm((3 * D,)),
            "w_out": nrm((D, D)),     "b_out": nrm((D,)),
            "ln2_g": jnp.ones((D,), dtype), "ln2_b": jnp.zeros((D,), dtype),
            "w_fc": nrm((D, 4 * D)),  "b_fc": nrm((4 * D,)),
            "w_proj": nrm((4 * D, D)), "b_proj": nrm((D,)),
        }
        params["layers"].append(layer)
    return params


# -------------------------------- forward pass -------------------------------

def text_encoder_forward(params, x, tokenized_prompts, *, num_heads):
    Nb, L, D = x.shape
    H = num_heads
    dh = D // H
    scale = 1.0 / float(dh) ** 0.5
    dtype = x.dtype

    # x = x + positional_embedding.type(dtype)     (elementwise glue)
    x = x + params["pos_emb"].astype(dtype)[None, :, :]

    # x.permute(1,0,2) -> transformer -> permute back (kept as (N,L,D): equivalent)
    for layer in params["layers"]:
        # ----- attention sub-block: x = x + proj(attn(ln_1(x))) -----
        qkv = ln_linear(x.reshape(Nb * L, D), layer["ln1_g"], layer["ln1_b"],
                        layer["w_qkv"], layer["b_qkv"])              # (Nb*L, 3D)
        x = attention_block(qkv.reshape(Nb, L, 3 * D),
                            layer["w_out"], layer["b_out"], x,
                            num_heads=H, scale=scale)                # residual fused

        # ----- MLP sub-block: x = x + proj(gelu(fc(ln_2(x)))) : fully fused -----
        x = mlp_block(x.reshape(Nb * L, D), layer["ln2_g"], layer["ln2_b"],
                      layer["w_fc"], layer["b_fc"],
                      layer["w_proj"], layer["b_proj"]).reshape(Nb, L, D)

    # x = ln_final(x)[arange(N), argmax] @ text_projection
    # LayerNorm is per-row, so gathering the EOT rows FIRST is exact and deletes a
    # full (Nb*L, D) HBM pass; ln_final is fused into the projection matmul.
    eot_idx = jnp.argmax(tokenized_prompts, axis=-1)                 # (Nb,)
    pooled = x[jnp.arange(Nb), eot_idx]                              # gather = glue
    out = ln_linear(pooled, params["lnf_g"], params["lnf_b"],
                    params["text_projection"], b=None)               # no bias in CLIP
    return out


# ----------------------------------- main ------------------------------------

if __name__ == "__main__":
    # small, module-consistent shapes
    N_BATCH, SEQ, DIM, HEADS, DEPTH, PROJ = 2, 8, 32, 4, 2, 32
    DTYPE = jnp.bfloat16   # bf16 storage; all LN/softmax/GELU math stays f32 in-kernel

    key = jax.random.PRNGKey(0)
    k_param, k_x, k_tok = jax.random.split(key, 3)

    params = init_params(k_param, depth=DEPTH, D=DIM, H=HEADS, L=SEQ,
                         proj_dim=PROJ, dtype=DTYPE)

    # prompt embeddings (what the PromptLearner would feed in)
    x = 0.02 * jax.random.normal(k_x, (N_BATCH, SEQ, DIM), dtype=DTYPE)

    # tokenized prompts: integer token ids; the EOT token has the largest id,
    # so argmax(-1) picks its position (positions 5 and 7 here).
    tok = jax.random.randint(k_tok, (N_BATCH, SEQ), 1, 100, dtype=jnp.int32)
    tok = tok.at[0, 5].set(49407).at[1, 7].set(49407)

    fwd = jax.jit(functools.partial(text_encoder_forward, num_heads=HEADS))
    out = fwd(params, x, tok)
    out = jax.block_until_ready(out)

    assert out.shape == (N_BATCH, PROJ) and out.dtype == DTYPE
    assert bool(jnp.all(jnp.isfinite(out.astype(jnp.float32))))
    print("KERNEL_OK")
</pallas_src>

<mosaic_0001>
module attributes {stable_mosaic.version = 11 : i64} {
  func.func @_ln_linear_kernel(%arg0: i32, %arg1: memref<16x32xbf16, #tpu.memory_space<vmem>>, %arg2: memref<1x32xbf16, #tpu.memory_space<vmem>>, %arg3: memref<1x32xbf16, #tpu.memory_space<vmem>>, %arg4: memref<32x96xbf16, #tpu.memory_space<vmem>>, %arg5: memref<1x96xbf16, #tpu.memory_space<vmem>>, %arg6: memref<16x96xbf16, #tpu.memory_space<vmem>>) attributes {dimension_semantics = [#tpu.dimension_semantics<parallel>], iteration_bounds = array<i64: 1>, scalar_prefetch = 0 : i64, scratch_operands = 0 : i64, tpu.core_type = #tpu.core_type<tc>, window_params = [{transform_indices = @transform_0, window_bounds = array<i64: 16, 32>}, {pipeline_mode = #tpu.pipeline_mode<synchronous>, transform_indices = @transform_1, window_bounds = array<i64: 1, 32>}, {pipeline_mode = #tpu.pipeline_mode<synchronous>, transform_indices = @transform_2, window_bounds = array<i64: 1, 32>}, {pipeline_mode = #tpu.pipeline_mode<synchronous>, transform_indices = @transform_3, window_bounds = array<i64: 32, 96>}, {pipeline_mode = #tpu.pipeline_mode<synchronous>, transform_indices = @transform_4, window_bounds = array<i64: 1, 96>}, {transform_indices = @transform_5, window_bounds = array<i64: 16, 96>}]} {
    %c0 = arith.constant 0 : index
    %c0_0 = arith.constant 0 : index
    %0 = vector.load %arg1[%c0, %c0_0] : memref<16x32xbf16, #tpu.memory_space<vmem>>, vector<16x32xbf16>
    %1 = arith.extf %0 : vector<16x32xbf16> to vector<16x32xf32>
    %cst = arith.constant dense<0.000000e+00> : vector<16xf32>
    %2 = vector.multi_reduction <add>, %1, %cst [1] : vector<16x32xf32> to vector<16xf32>
    %3 = vector.shape_cast %2 : vector<16xf32> to vector<16x1xf32>
    %cst_1 = arith.constant 3.200000e+01 : f32
    %4 = vector.broadcast %cst_1 : f32 to vector<16x1xf32>
    %5 = arith.divf %3, %4 : vector<16x1xf32>
    %6 = vector.broadcast %5 : vector<16x1xf32> to vector<16x32xf32>
    %7 = arith.subf %1, %6 : vector<16x32xf32>
    %8 = arith.mulf %7, %7 : vector<16x32xf32>
    %cst_2 = arith.constant dense<0.000000e+00> : vector<16xf32>
    %9 = vector.multi_reduction <add>, %8, %cst_2 [1] : vector<16x32xf32> to vector<16xf32>
    %10 = vector.shape_cast %9 : vector<16xf32> to vector<16x1xf32>
    %cst_3 = arith.constant 3.200000e+01 : f32
    %11 = vector.broadcast %cst_3 : f32 to vector<16x1xf32>
    %12 = arith.divf %10, %11 : vector<16x1xf32>
    %cst_4 = arith.constant 9.99999974E-6 : f32
    %13 = vector.broadcast %cst_4 : f32 to vector<16x1xf32>
    %14 = arith.addf %12, %13 : vector<16x1xf32>
    %15 = math.rsqrt %14 : vector<16x1xf32>
    %16 = vector.broadcast %15 : vector<16x1xf32> to vector<16x32xf32>
    %17 = arith.mulf %7, %16 : vector<16x32xf32>
    %c0_5 = arith.constant 0 : index
    %c0_6 = arith.constant 0 : index
    %18 = vector.load %arg2[%c0_5, %c0_6] : memref<1x32xbf16, #tpu.memory_space<vmem>>, vector<1x32xbf16>
    %19 = arith.extf %18 : vector<1x32xbf16> to vector<1x32xf32>
    %20 = vector.broadcast %19 : vector<1x32xf32> to vector<16x32xf32>
    %21 = arith.mulf %17, %20 : vector<16x32xf32>
    %c0_7 = arith.constant 0 : index
    %c0_8 = arith.constant 0 : index
    %22 = vector.load %arg3[%c0_7, %c0_8] : memref<1x32xbf16, #tpu.memory_space<vmem>>, vector<1x32xbf16>
    %23 = arith.extf %22 : vector<1x32xbf16> to vector<1x32xf32>
    %24 = vector.broadcast %23 : vector<1x32xf32> to vector<16x32xf32>
    %25 = arith.addf %21, %24 : vector<16x32xf32>
    %26 = arith.truncf %25 : vector<16x32xf32> to vector<16x32xbf16>
    %c0_9 = arith.constant 0 : index
    %c0_10 = arith.constant 0 : index
    %27 = vector.load %arg4[%c0_9, %c0_10] : memref<32x96xbf16, #tpu.memory_space<vmem>>, vector<32x96xbf16>
    %cst_11 = arith.constant dense<0.000000e+00> : vector<16x96xf32>
    %28 = tpu.matmul %26, %27, %cst_11 {dimension_numbers = #tpu.dot_dimension_numbers<[1], [0], [0], [1], [0, 0, 1, 1], [], []>} : vector<16x32xbf16>, vector<32x96xbf16>, vector<16x96xf32> -> vector<16x96xf32>
    %c0_12 = arith.constant 0 : index
    %c0_13 = arith.constant 0 : index
    %29 = vector.load %arg5[%c0_12, %c0_13] : memref<1x96xbf16, #tpu.memory_space<vmem>>, vector<1x96xbf16>
    %30 = arith.extf %29 : vector<1x96xbf16> to vector<1x96xf32>
    %31 = vector.broadcast %30 : vector<1x96xf32> to vector<16x96xf32>
    %32 = arith.addf %28, %31 : vector<16x96xf32>
    %33 = arith.truncf %32 : vector<16x96xf32> to vector<16x96xbf16>
    %c0_14 = arith.constant 0 : index
    %c0_15 = arith.constant 0 : index
    %34 = vector.load %arg6[%c0_14, %c0_15] : memref<16x96xbf16, #tpu.memory_space<vmem>>, vector<16x96xbf16>
    tpu.vector_store %arg6[%c0_14, %c0_15], %33 {strides = array<i32>} : memref<16x96xbf16, #tpu.memory_space<vmem>>, vector<16x96xbf16>,
    return
  }
  func.func @transform_0(%arg0: i32) -> (i32, i32) {
    %c0_i32 = arith.constant 0 : i32
    %c0_i32_0 = arith.constant 0 : i32
    return %arg0, %c0_i32 : i32, i32
  }
  func.func @transform_1(%arg0: i32) -> (i32, i32) {
    %c0_i32 = arith.constant 0 : i32
    %c0_i32_0 = arith.constant 0 : i32
    %c0_i32_1 = arith.constant 0 : i32
    return %c0_i32, %c0_i32_0 : i32, i32
  }
  func.func @transform_2(%arg0: i32) -> (i32, i32) {
    %c0_i32 = arith.constant 0 : i32
    %c0_i32_0 = arith.constant 0 : i32
    %c0_i32_1 = arith.constant 0 : i32
    return %c0_i32, %c0_i32_0 : i32, i32
  }
  func.func @transform_3(%arg0: i32) -> (i32, i32) {
    %c0_i32 = arith.constant 0 : i32
    %c0_i32_0 = arith.constant 0 : i32
    %c0_i32_1 = arith.constant 0 : i32
    return %c0_i32, %c0_i32_0 : i32, i32
  }
  func.func @transform_4(%arg0: i32) -> (i32, i32) {
    %c0_i32 = arith.constant 0 : i32
    %c0_i32_0 = arith.constant 0 : i32
    %c0_i32_1 = arith.constant 0 : i32
    return %c0_i32, %c0_i32_0 : i32, i32
  }
  func.func @transform_5(%arg0: i32) -> (i32, i32) {
    %c0_i32 = arith.constant 0 : i32
    %c0_i32_0 = arith.constant 0 : i32
    return %arg0, %c0_i32 : i32, i32
  }
}

module attributes {stable_mosaic.version = 11 : i64} {
  func.func @_attn_block_kernel(%arg0: i32, %arg1: memref<1x8x96xbf16, #tpu.memory_space<vmem>>, %arg2: memref<32x32xbf16, #tpu.memory_space<vmem>>, %arg3: memref<1x32xbf16, #tpu.memory_space<vmem>>, %arg4: memref<1x8x32xbf16, #tpu.memory_space<vmem>>, %arg5: memref<1x8x32xbf16, #tpu.memory_space<vmem>>, %arg6: memref<8x32xbf16, #tpu.memory_space<vmem>>) attributes {dimension_semantics = [#tpu.dimension_semantics<parallel>], iteration_bounds = array<i64: 2>, scalar_prefetch = 0 : i64, scratch_operands = 1 : i64, tpu.core_type = #tpu.core_type<tc>, window_params = [{transform_indices = @transform_0, window_bounds = array<i64: 1, 8, 96>}, {pipeline_mode = #tpu.pipeline_mode<synchronous>, transform_indices = @transform_1, window_bounds = array<i64: 32, 32>}, {pipeline_mode = #tpu.pipeline_mode<synchronous>, transform_indices = @transform_2, window_bounds = array<i64: 1, 32>}, {transform_indices = @transform_3, window_bounds = array<i64: 1, 8, 32>}, {transform_indices = @transform_4, window_bounds = array<i64: 1, 8, 32>}]} {
    %0 = tpu.iota {dimensions = array<i32: 0>} : vector<8x8xi32>
    %1 = tpu.iota {dimensions = array<i32: 1>} : vector<8x8xi32>
    %2 = arith.cmpi sle, %1, %0 : vector<8x8xi32>
    %c0 = arith.constant 0 : index
    %c0_0 = arith.constant 0 : index
    %c0_1 = arith.constant 0 : index
    %3 = vector.load %arg1[%c0, %c0_0, %c0_1] : memref<1x8x96xbf16, #tpu.memory_space<vmem>>, vector<1x8x8xbf16>
    %4 = vector.shape_cast %3 : vector<1x8x8xbf16> to vector<8x8xbf16>
    %5 = arith.extf %4 : vector<8x8xbf16> to vector<8x8xf32>
    %cst = arith.constant 0.353553385 : f32
    %6 = vector.broadcast %cst : f32 to vector<8x8xf32>
    %7 = arith.mulf %5, %6 : vector<8x8xf32>
    %c0_2 = arith.constant 0 : index
    %c0_3 = arith.constant 0 : index
    %c32 = arith.constant 32 : index
    %8 = vector.load %arg1[%c0_2, %c0_3, %c32] : memref<1x8x96xbf16, #tpu.memory_space<vmem>>, vector<1x8x8xbf16>
    %9 = vector.shape_cast %8 : vector<1x8x8xbf16> to vector<8x8xbf16>
    %10 = arith.extf %9 : vector<8x8xbf16> to vector<8x8xf32>
    %c0_4 = arith.constant 0 : index
    %c0_5 = arith.constant 0 : index
    %c64 = arith.constant 64 : index
    %11 = vector.load %arg1[%c0_4, %c0_5, %c64] : memref<1x8x96xbf16, #tpu.memory_space<vmem>>, vector<1x8x8xbf16>
    %12 = vector.shape_cast %11 : vector<1x8x8xbf16> to vector<8x8xbf16>
    %13 = arith.extf %12 : vector<8x8xbf16> to vector<8x8xf32>
    %cst_6 = arith.constant dense<0.000000e+00> : vector<8x8xf32>
    %14 = tpu.matmul %7, %10, %cst_6 {dimension_numbers = #tpu.dot_dimension_numbers<[1], [1], [0], [0], [0, 0, 1, 0], [], []>} : vector<8x8xf32>, vector<8x8xf32>, vector<8x8xf32> -> vector<8x8xf32>
    %cst_7 = arith.constant -1.000000e+30 : f32
    %15 = vector.broadcast %cst_7 : f32 to vector<8x8xf32>
    %16 = arith.select %2, %14, %15 : vector<8x8xi1>, vector<8x8xf32>
    %cst_8 = arith.constant dense<0xFF800000> : vector<8xf32>
    %17 = vector.multi_reduction <maximumf>, %16, %cst_8 [1] : vector<8x8xf32> to vector<8xf32>
    %18 = vector.shape_cast %17 : vector<8xf32> to vector<8x1xf32>
    %19 = vector.broadcast %18 : vector<8x1xf32> to vector<8x8xf32>
    %20 = arith.subf %16, %19 : vector<8x8xf32>
    %21 = math.exp %20 : vector<8x8xf32>
    %cst_9 = arith.constant dense<0.000000e+00> : vector<8xf32>
    %22 = vector.multi_reduction <add>, %21, %cst_9 [1] : vector<8x8xf32> to vector<8xf32>
    %23 = vector.shape_cast %22 : vector<8xf32> to vector<8x1xf32>
    %24 = tpu.reciprocal %23 {approx = true} : vector<8x1xf32> -> vector<8x1xf32>
    %25 = vector.broadcast %24 : vector<8x1xf32> to vector<8x8xf32>
    %26 = arith.mulf %21, %25 : vector<8x8xf32>
    %cst_10 = arith.constant dense<0.000000e+00> : vector<8x8xf32>
    %27 = tpu.matmul %26, %13, %cst_10 {dimension_numbers = #tpu.dot_dimension_numbers<[1], [0], [0], [1], [0, 0, 1, 1], [], []>} : vector<8x8xf32>, vector<8x8xf32>, vector<8x8xf32> -> vector<8x8xf32>
    %28 = arith.truncf %27 : vector<8x8xf32> to vector<8x8xbf16>
    %c0_11 = arith.constant 0 : index
    %c0_12 = arith.constant 0 : index
    %29 = vector.load %arg6[%c0_11, %c0_12] : memref<8x32xbf16, #tpu.memory_space<vmem>>, vector<8x8xbf16>
    tpu.vector_store %arg6[%c0_11, %c0_12], %28 {strides = array<i32>} : memref<8x32xbf16, #tpu.memory_space<vmem>>, vector<8x8xbf16>,
    %c0_13 = arith.constant 0 : index
    %c0_14 = arith.constant 0 : index
    %c8 = arith.constant 8 : index
    %30 = vector.load %arg1[%c0_13, %c0_14, %c8] : memref<1x8x96xbf16, #tpu.memory_space<vmem>>, vector<1x8x8xbf16>
    %31 = vector.shape_cast %30 : vector<1x8x8xbf16> to vector<8x8xbf16>
    %32 = arith.extf %31 : vector<8x8xbf16> to vector<8x8xf32>
    %cst_15 = arith.constant 0.353553385 : f32
    %33 = vector.broadcast %cst_15 : f32 to vector<8x8xf32>
    %34 = arith.mulf %32, %33 : vector<8x8xf32>
    %c0_16 = arith.constant 0 : index
    %c0_17 = arith.constant 0 : index
    %c40 = arith.constant 40 : index
    %35 = vector.load %arg1[%c0_16, %c0_17, %c40] : memref<1x8x96xbf16, #tpu.memory_space<vmem>>, vector<1x8x8xbf16>
    %36 = vector.shape_cast %35 : vector<1x8x8xbf16> to vector<8x8xbf16>
    %37 = arith.extf %36 : vector<8x8xbf16> to vector<8x8xf32>
    %c0_18 = arith.constant 0 : index
    %c0_19 = arith.constant 0 : index
    %c72 = arith.constant 72 : index
    %38 = vector.load %arg1[%c0_18, %c0_19, %c72] : memref<1x8x96xbf16, #tpu.memory_space<vmem>>, vector<1x8x8xbf16>
    %39 = vector.shape_cast %38 : vector<1x8x8xbf16> to vector<8x8xbf16>
    %40 = arith.extf %39 : vector<8x8xbf16> to vector<8x8xf32>
    %cst_20 = arith.constant dense<0.000000e+00> : vector<8x8xf32>
    %41 = tpu.matmul %34, %37, %cst_20 {dimension_numbers = #tpu.dot_dimension_numbers<[1], [1], [0], [0], [0, 0, 1, 0], [], []>} : vector<8x8xf32>, vector<8x8xf32>, vector<8x8xf32> -> vector<8x8xf32>
    %cst_21 = arith.constant -1.000000e+30 : f32
    %42 = vector.broadcast %cst_21 : f32 to vector<8x8xf32>
    %43 = arith.select %2, %41, %42 : vector<8x8xi1>, vector<8x8xf32>
    %cst_22 = arith.constant dense<0xFF800000> : vector<8xf32>
    %44 = vector.multi_reduction <maximumf>, %43, %cst_22 [1] : vector<8x8xf32> to vector<8xf32>
    %45 = vector.shape_cast %44 : vector<8xf32> to vector<8x1xf32>
    %46 = vector.broadcast %45 : vector<8x1xf32> to vector<8x8xf32>
    %47 = arith.subf %43, %46 : vector<8x8xf32>
    %48 = math.exp %47 : vector<8x8xf32>
    %cst_23 = arith.constant dense<0.000000e+00> : vector<8xf32>
    %49 = vector.multi_reduction <add>, %48, %cst_23 [1] : vector<8x8xf32> to vector<8xf32>
    %50 = vector.shape_cast %49 : vector<8xf32> to vector<8x1xf32>
    %51 = tpu.reciprocal %50 {approx = true} : vector<8x1xf32> -> vector<8x1xf32>
    %52 = vector.broadcast %51 : vector<8x1xf32> to vector<8x8xf32>
    %53 = arith.mulf %48, %52 : vector<8x8xf32>
    %cst_24 = arith.constant dense<0.000000e+00> : vector<8x8xf32>
    %54 = tpu.matmul %53, %40, %cst_24 {dimension_numbers = #tpu.dot_dimension_numbers<[1], [0], [0], [1], [0, 0, 1, 1], [], []>} : vector<8x8xf32>, vector<8x8xf32>, vector<8x8xf32> -> vector<8x8xf32>
    %55 = arith.truncf %54 : vector<8x8xf32> to vector<8x8xbf16>
    %c0_25 = arith.constant 0 : index
    %c8_26 = arith.constant 8 : index
    %56 = vector.load %arg6[%c0_25, %c8_26] : memref<8x32xbf16, #tpu.memory_space<vmem>>, vector<8x8xbf16>
    tpu.vector_store %arg6[%c0_25, %c8_26], %55 {strides = array<i32>} : memref<8x32xbf16, #tpu.memory_space<vmem>>, vector<8x8xbf16>,
    %c0_27 = arith.constant 0 : index
    %c0_28 = arith.constant 0 : index
    %c16 = arith.constant 16 : index
    %57 = vector.load %arg1[%c0_27, %c0_28, %c16] : memref<1x8x96xbf16, #tpu.memory_space<vmem>>, vector<1x8x8xbf16>
    %58 = vector.shape_cast %57 : vector<1x8x8xbf16> to vector<8x8xbf16>
    %59 = arith.extf %58 : vector<8x8xbf16> to vector<8x8xf32>
    %cst_29 = arith.constant 0.353553385 : f32
    %60 = vector.broadcast %cst_29 : f32 to vector<8x8xf32>
    %61 = arith.mulf %59, %60 : vector<8x8xf32>
    %c0_30 = arith.constant 0 : index
    %c0_31 = arith.constant 0 : index
    %c48 = arith.constant 48 : index
    %62 = vector.load %arg1[%c0_30, %c0_31, %c48] : memref<1x8x96xbf16, #tpu.memory_space<vmem>>, vector<1x8x8xbf16>
    %63 = vector.shape_cast %62 : vector<1x8x8xbf16> to vector<8x8xbf16>
    %64 = arith.extf %63 : vector<8x8xbf16> to vector<8x8xf32>
    %c0_32 = arith.constant 0 : index
    %c0_33 = arith.constant 0 : index
    %c80 = arith.constant 80 : index
    %65 = vector.load %arg1[%c0_32, %c0_33, %c80] : memref<1x8x96xbf16, #tpu.memory_space<vmem>>, vector<1x8x8xbf16>
    %66 = vector.shape_cast %65 : vector<1x8x8xbf16> to vector<8x8xbf16>
    %67 = arith.extf %66 : vector<8x8xbf16> to vector<8x8xf32>
    %cst_34 = arith.constant dense<0.000000e+00> : vector<8x8xf32>
    %68 = tpu.matmul %61, %64, %cst_34 {dimension_numbers = #tpu.dot_dimension_numbers<[1], [1], [0], [0], [0, 0, 1, 0], [], []>} : vector<8x8xf32>, vector<8x8xf32>, vector<8x8xf32> -> vector<8x8xf32>
    %cst_35 = arith.constant -1.000000e+30 : f32
    %69 = vector.broadcast %cst_35 : f32 to vector<8x8xf32>
    %70 = arith.select %2, %68, %69 : vector<8x8xi1>, vector<8x8xf32>
    %cst_36 = arith.constant dense<0xFF800000> : vector<8xf32>
    %71 = vector.multi_reduction <maximumf>, %70, %cst_36 [1] : vector<8x8xf32> to vector<8xf32>
    %72 = vector.shape_cast %71 : vector<8xf32> to vector<8x1xf32>
    %73 = vector.broadcast %72 : vector<8x1xf32> to vector<8x8xf32>
    %74 = arith.subf %70, %73 : vector<8x8xf32>
    %75 = math.exp %74 : vector<8x8xf32>
    %cst_37 = arith.constant dense<0.000000e+00> : vector<8xf32>
    %76 = vector.multi_reduction <add>, %75, %cst_37 [1] : vector<8x8xf32> to vector<8xf32>
    %77 = vector.shape_cast %76 : vector<8xf32> to vector<8x1xf32>
    %78 = tpu.reciprocal %77 {approx = true} : vector<8x1xf32> -> vector<8x1xf32>
    %79 = vector.broadcast %78 : vector<8x1xf32> to vector<8x8xf32>
    %80 = arith.mulf %75, %79 : vector<8x8xf32>
    %cst_38 = arith.constant dense<0.000000e+00> : vector<8x8xf32>
    %81 = tpu.matmul %80, %67, %cst_38 {dimension_numbers = #tpu.dot_dimension_numbers<[1], [0], [0], [1], [0, 0, 1, 1], [], []>} : vector<8x8xf32>, vector<8x8xf32>, vector<8x8xf32> -> vector<8x8xf32>
    %82 = arith.truncf %81 : vector<8x8xf32> to vector<8x8xbf16>
    %c0_39 = arith.constant 0 : index
    %c16_40 = arith.constant 16 : index
    %83 = vector.load %arg6[%c0_39, %c16_40] : memref<8x32xbf16, #tpu.memory_space<vmem>>, vector<8x8xbf16>
    tpu.vector_store %arg6[%c0_39, %c16_40], %82 {strides = array<i32>} : memref<8x32xbf16, #tpu.memory_space<vmem>>, vector<8x8xbf16>,
    %c0_41 = arith.constant 0 : index
    %c0_42 = arith.constant 0 : index
    %c24 = arith.constant 24 : index
    %84 = vector.load %arg1[%c0_41, %c0_42, %c24] : memref<1x8x96xbf16, #tpu.memory_space<vmem>>, vector<1x8x8xbf16>
    %85 = vector.shape_cast %84 : vector<1x8x8xbf16> to vector<8x8xbf16>
    %86 = arith.extf %85 : vector<8x8xbf16> to vector<8x8xf32>
    %cst_43 = arith.constant 0.353553385 : f32
    %87 = vector.broadcast %cst_43 : f32 to vector<8x8xf32>
    %88 = arith.mulf %86, %87 : vector<8x8xf32>
    %c0_44 = arith.constant 0 : index
    %c0_45 = arith.constant 0 : index
    %c56 = arith.constant 56 : index
    %89 = vector.load %arg1[%c0_44, %c0_45, %c56] : memref<1x8x96xbf16, #tpu.memory_space<vmem>>, vector<1x8x8xbf16>
    %90 = vector.shape_cast %89 : vector<1x8x8xbf16> to vector<8x8xbf16>
    %91 = arith.extf %90 : vector<8x8xbf16> to vector<8x8xf32>
    %c0_46 = arith.constant 0 : index
    %c0_47 = arith.constant 0 : index
    %c88 = arith.constant 88 : index
    %92 = vector.load %arg1[%c0_46, %c0_47, %c88] : memref<1x8x96xbf16, #tpu.memory_space<vmem>>, vector<1x8x8xbf16>
    %93 = vector.shape_cast %92 : vector<1x8x8xbf16> to vector<8x8xbf16>
    %94 = arith.extf %93 : vector<8x8xbf16> to vector<8x8xf32>
    %cst_48 = arith.constant dense<0.000000e+00> : vector<8x8xf32>
    %95 = tpu.matmul %88, %91, %cst_48 {dimension_numbers = #tpu.dot_dimension_numbers<[1], [1], [0], [0], [0, 0, 1, 0], [], []>} : vector<8x8xf32>, vector<8x8xf32>, vector<8x8xf32> -> vector<8x8xf32>
    %cst_49 = arith.constant -1.000000e+30 : f32
    %96 = vector.broadcast %cst_49 : f32 to vector<8x8xf32>
    %97 = arith.select %2, %95, %96 : vector<8x8xi1>, vector<8x8xf32>
    %cst_50 = arith.constant dense<0xFF800000> : vector<8xf32>
    %98 = vector.multi_reduction <maximumf>, %97, %cst_50 [1] : vector<8x8xf32> to vector<8xf32>
    %99 = vector.shape_cast %98 : vector<8xf32> to vector<8x1xf32>
    %100 = vector.broadcast %99 : vector<8x1xf32> to vector<8x8xf32>
    %101 = arith.subf %97, %100 : vector<8x8xf32>
    %102 = math.exp %101 : vector<8x8xf32>
    %cst_51 = arith.constant dense<0.000000e+00> : vector<8xf32>
    %103 = vector.multi_reduction <add>, %102, %cst_51 [1] : vector<8x8xf32> to vector<8xf32>
    %104 = vector.shape_cast %103 : vector<8xf32> to vector<8x1xf32>
    %105 = tpu.reciprocal %104 {approx = true} : vector<8x1xf32> -> vector<8x1xf32>
    %106 = vector.broadcast %105 : vector<8x1xf32> to vector<8x8xf32>
    %107 = arith.mulf %102, %106 : vector<8x8xf32>
    %cst_52 = arith.constant dense<0.000000e+00> : vector<8x8xf32>
    %108 = tpu.matmul %107, %94, %cst_52 {dimension_numbers = #tpu.dot_dimension_numbers<[1], [0], [0], [1], [0, 0, 1, 1], [], []>} : vector<8x8xf32>, vector<8x8xf32>, vector<8x8xf32> -> vector<8x8xf32>
    %109 = arith.truncf %108 : vector<8x8xf32> to vector<8x8xbf16>
    %c0_53 = arith.constant 0 : index
    %c24_54 = arith.constant 24 : index
    %110 = vector.load %arg6[%c0_53, %c24_54] : memref<8x32xbf16, #tpu.memory_space<vmem>>, vector<8x8xbf16>
    tpu.vector_store %arg6[%c0_53, %c24_54], %109 {strides = array<i32>} : memref<8x32xbf16, #tpu.memory_space<vmem>>, vector<8x8xbf16>,
    %c0_55 = arith.constant 0 : index
    %c0_56 = arith.constant 0 : index
    %111 = vector.load %arg6[%c0_55, %c0_56] : memref<8x32xbf16, #tpu.memory_space<vmem>>, vector<8x32xbf16>
    %c0_57 = arith.constant 0 : index
    %c0_58 = arith.constant 0 : index
    %112 = vector.load %arg2[%c0_57, %c0_58] : memref<32x32xbf16, #tpu.memory_space<vmem>>, vector<32x32xbf16>
    %cst_59 = arith.constant dense<0.000000e+00> : vector<8x32xf32>
    %113 = tpu.matmul %111, %112, %cst_59 {dimension_numbers = #tpu.dot_dimension_numbers<[1], [0], [0], [1], [0, 0, 1, 1], [], []>} : vector<8x32xbf16>, vector<32x32xbf16>, vector<8x32xf32> -> vector<8x32xf32>
    %c0_60 = arith.constant 0 : index
    %c0_61 = arith.constant 0 : index
    %114 = vector.load %arg3[%c0_60, %c0_61] : memref<1x32xbf16, #tpu.memory_space<vmem>>, vector<1x32xbf16>
    %115 = arith.extf %114 : vector<1x32xbf16> to vector<1x32xf32>
    %116 = vector.broadcast %115 : vector<1x32xf32> to vector<8x32xf32>
    %117 = arith.addf %113, %116 : vector<8x32xf32>
    %c0_62 = arith.constant 0 : index
    %c0_63 = arith.constant 0 : index
    %c0_64 = arith.constant 0 : index
    %118 = vector.load %arg4[%c0_62, %c0_63, %c0_64] : memref<1x8x32xbf16, #tpu.memory_space<vmem>>, vector<1x8x32xbf16>
    %119 = vector.shape_cast %118 : vector<1x8x32xbf16> to vector<8x32xbf16>
    %120 = arith.extf %119 : vector<8x32xbf16> to vector<8x32xf32>
    %121 = arith.addf %117, %120 : vector<8x32xf32>
    %122 = arith.truncf %121 : vector<8x32xf32> to vector<8x32xbf16>
    %c0_65 = arith.constant 0 : index
    %c0_66 = arith.constant 0 : index
    %c0_67 = arith.constant 0 : index
    %123 = vector.load %arg5[%c0_65, %c0_66, %c0_67] : memref<1x8x32xbf16, #tpu.memory_space<vmem>>, vector<1x8x32xbf16>
    %124 = vector.shape_cast %123 : vector<1x8x32xbf16> to vector<8x32xbf16>
    %125 = vector.shape_cast %122 : vector<8x32xbf16> to vector<1x8x32xbf16>
    tpu.vector_store %arg5[%c0_65, %c0_66, %c0_67], %125 {strides = array<i32>} : memref<1x8x32xbf16, #tpu.memory_space<vmem>>, vector<1x8x32xbf16>,
    return
  }
  func.func @transform_0(%arg0: i32) -> (i32, i32, i32) {
    %c0_i32 = arith.constant 0 : i32
    %c0_i32_0 = arith.constant 0 : i32
    %c0_i32_1 = arith.constant 0 : i32
    return %arg0, %c0_i32, %c0_i32_0 : i32, i32, i32
  }
  func.func @transform_1(%arg0: i32) -> (i32, i32) {
    %c0_i32 = arith.constant 0 : i32
    %c0_i32_0 = arith.constant 0 : i32
    %c0_i32_1 = arith.constant 0 : i32
    return %c0_i32, %c0_i32_0 : i32, i32
  }
  func.func @transform_2(%arg0: i32) -> (i32, i32) {
    %c0_i32 = arith.constant 0 : i32
    %c0_i32_0 = arith.constant 0 : i32
    %c0_i32_1 = arith.constant 0 : i32
    return %c0_i32, %c0_i32_0 : i32, i32
  }
  func.func @transform_3(%arg0: i32) -> (i32, i32, i32) {
    %c0_i32 = arith.constant 0 : i32
    %c0_i32_0 = arith.constant 0 : i32
    %c0_i32_1 = arith.constant 0 : i32
    return %arg0, %c0_i32, %c0_i32_0 : i32, i32, i32
  }
  func.func @transform_4(%arg0: i32) -> (i32, i32, i32) {
    %c0_i32 = arith.constant 0 : i32
    %c0_i32_0 = arith.constant 0 : i32
    %c0_i32_1 = arith.constant 0 : i32
    return %arg0, %c0_i32, %c0_i32_0 : i32, i32, i32
  }
}

module attributes {stable_mosaic.version = 11 : i64} {
  func.func @_mlp_block_kernel(%arg0: i32, %arg1: memref<16x32xbf16, #tpu.memory_space<vmem>>, %arg2: memref<1x32xbf16, #tpu.memory_space<vmem>>, %arg3: memref<1x32xbf16, #tpu.memory_space<vmem>>, %arg4: memref<32x128xbf16, #tpu.memory_space<vmem>>, %arg5: memref<1x128xbf16, #tpu.memory_space<vmem>>, %arg6: memref<128x32xbf16, #tpu.memory_space<vmem>>, %arg7: memref<1x32xbf16, #tpu.memory_space<vmem>>, %arg8: memref<16x32xbf16, #tpu.memory_space<vmem>>, %arg9: memref<16x128xbf16, #tpu.memory_space<vmem>>) attributes {dimension_semantics = [#tpu.dimension_semantics<parallel>], iteration_bounds = array<i64: 1>, scalar_prefetch = 0 : i64, scratch_operands = 1 : i64, tpu.core_type = #tpu.core_type<tc>, window_params = [{transform_indices = @transform_0, window_bounds = array<i64: 16, 32>}, {pipeline_mode = #tpu.pipeline_mode<synchronous>, transform_indices = @transform_1, window_bounds = array<i64: 1, 32>}, {pipeline_mode = #tpu.pipeline_mode<synchronous>, transform_indices = @transform_2, window_bounds = array<i64: 1, 32>}, {pipeline_mode = #tpu.pipeline_mode<synchronous>, transform_indices = @transform_3, window_bounds = array<i64: 32, 128>}, {pipeline_mode = #tpu.pipeline_mode<synchronous>, transform_indices = @transform_4, window_bounds = array<i64: 1, 128>}, {pipeline_mode = #tpu.pipeline_mode<synchronous>, transform_indices = @transform_5, window_bounds = array<i64: 128, 32>}, {pipeline_mode = #tpu.pipeline_mode<synchronous>, transform_indices = @transform_6, window_bounds = array<i64: 1, 32>}, {transform_indices = @transform_7, window_bounds = array<i64: 16, 32>}]} {
    %c0 = arith.constant 0 : index
    %c0_0 = arith.constant 0 : index
    %0 = vector.load %arg1[%c0, %c0_0] : memref<16x32xbf16, #tpu.memory_space<vmem>>, vector<16x32xbf16>
    %1 = arith.extf %0 : vector<16x32xbf16> to vector<16x32xf32>
    %cst = arith.constant dense<0.000000e+00> : vector<16xf32>
    %2 = vector.multi_reduction <add>, %1, %cst [1] : vector<16x32xf32> to vector<16xf32>
    %3 = vector.shape_cast %2 : vector<16xf32> to vector<16x1xf32>
    %cst_1 = arith.constant 3.200000e+01 : f32
    %4 = vector.broadcast %cst_1 : f32 to vector<16x1xf32>
    %5 = arith.divf %3, %4 : vector<16x1xf32>
    %6 = vector.broadcast %5 : vector<16x1xf32> to vector<16x32xf32>
    %7 = arith.subf %1, %6 : vector<16x32xf32>
    %8 = arith.mulf %7, %7 : vector<16x32xf32>
    %cst_2 = arith.constant dense<0.000000e+00> : vector<16xf32>
    %9 = vector.multi_reduction <add>, %8, %cst_2 [1] : vector<16x32xf32> to vector<16xf32>
    %10 = vector.shape_cast %9 : vector<16xf32> to vector<16x1xf32>
    %cst_3 = arith.constant 3.200000e+01 : f32
    %11 = vector.broadcast %cst_3 : f32 to vector<16x1xf32>
    %12 = arith.divf %10, %11 : vector<16x1xf32>
    %cst_4 = arith.constant 9.99999974E-6 : f32
    %13 = vector.broadcast %cst_4 : f32 to vector<16x1xf32>
    %14 = arith.addf %12, %13 : vector<16x1xf32>
    %15 = math.rsqrt %14 : vector<16x1xf32>
    %16 = vector.broadcast %15 : vector<16x1xf32> to vector<16x32xf32>
    %17 = arith.mulf %7, %16 : vector<16x32xf32>
    %c0_5 = arith.constant 0 : index
    %c0_6 = arith.constant 0 : index
    %18 = vector.load %arg2[%c0_5, %c0_6] : memref<1x32xbf16, #tpu.memory_space<vmem>>, vector<1x32xbf16>
    %19 = arith.extf %18 : vector<1x32xbf16> to vector<1x32xf32>
    %20 = vector.broadcast %19 : vector<1x32xf32> to vector<16x32xf32>
    %21 = arith.mulf %17, %20 : vector<16x32xf32>
    %c0_7 = arith.constant 0 : index
    %c0_8 = arith.constant 0 : index
    %22 = vector.load %arg3[%c0_7, %c0_8] : memref<1x32xbf16, #tpu.memory_space<vmem>>, vector<1x32xbf16>
    %23 = arith.extf %22 : vector<1x32xbf16> to vector<1x32xf32>
    %24 = vector.broadcast %23 : vector<1x32xf32> to vector<16x32xf32>
    %25 = arith.addf %21, %24 : vector<16x32xf32>
    %26 = arith.truncf %25 : vector<16x32xf32> to vector<16x32xbf16>
    %c0_9 = arith.constant 0 : index
    %c0_10 = arith.constant 0 : index
    %27 = vector.load %arg4[%c0_9, %c0_10] : memref<32x128xbf16, #tpu.memory_space<vmem>>, vector<32x128xbf16>
    %cst_11 = arith.constant dense<0.000000e+00> : vector<16x128xf32>
    %28 = tpu.matmul %26, %27, %cst_11 {dimension_numbers = #tpu.dot_dimension_numbers<[1], [0], [0], [1], [0, 0, 1, 1], [], []>} : vector<16x32xbf16>, vector<32x128xbf16>, vector<16x128xf32> -> vector<16x128xf32>
    %c0_12 = arith.constant 0 : index
    %c0_13 = arith.constant 0 : index
    %29 = vector.load %arg5[%c0_12, %c0_13] : memref<1x128xbf16, #tpu.memory_space<vmem>>, vector<1x128xbf16>
    %30 = arith.extf %29 : vector<1x128xbf16> to vector<1x128xf32>
    %31 = vector.broadcast %30 : vector<1x128xf32> to vector<16x128xf32>
    %32 = arith.addf %28, %31 : vector<16x128xf32>
    %cst_14 = arith.constant 1.702000e+00 : f32
    %33 = vector.broadcast %cst_14 : f32 to vector<16x128xf32>
    %34 = arith.mulf %33, %32 : vector<16x128xf32>
    %35 = arith.negf %34 : vector<16x128xf32>
    %36 = math.exp %35 : vector<16x128xf32>
    %cst_15 = arith.constant 1.000000e+00 : f32
    %37 = vector.broadcast %cst_15 : f32 to vector<16x128xf32>
    %38 = arith.addf %37, %36 : vector<16x128xf32>
    %39 = arith.divf %37, %38 : vector<16x128xf32>
    %40 = arith.mulf %32, %39 : vector<16x128xf32>
    %41 = arith.truncf %40 : vector<16x128xf32> to vector<16x128xbf16>
    %c0_16 = arith.constant 0 : index
    %c0_17 = arith.constant 0 : index
    %42 = vector.load %arg9[%c0_16, %c0_17] : memref<16x128xbf16, #tpu.memory_space<vmem>>, vector<16x128xbf16>
    tpu.vector_store %arg9[%c0_16, %c0_17], %41 {strides = array<i32>} : memref<16x128xbf16, #tpu.memory_space<vmem>>, vector<16x128xbf16>,
    %c0_18 = arith.constant 0 : index
    %c0_19 = arith.constant 0 : index
    %43 = vector.load %arg9[%c0_18, %c0_19] : memref<16x128xbf16, #tpu.memory_space<vmem>>, vector<16x128xbf16>
    %c0_20 = arith.constant 0 : index
    %c0_21 = arith.constant 0 : index
    %44 = vector.load %arg6[%c0_20, %c0_21] : memref<128x32xbf16, #tpu.memory_space<vmem>>, vector<128x32xbf16>
    %cst_22 = arith.constant dense<0.000000e+00> : vector<16x32xf32>
    %45 = tpu.matmul %43, %44, %cst_22 {dimension_numbers = #tpu.dot_dimension_numbers<[1], [0], [0], [1], [0, 0, 1, 1], [], []>} : vector<16x128xbf16>, vector<128x32xbf16>, vector<16x32xf32> -> vector<16x32xf32>
    %c0_23 = arith.constant 0 : index
    %c0_24 = arith.constant 0 : index
    %46 = vector.load %arg7[%c0_23, %c0_24] : memref<1x32xbf16, #tpu.memory_space<vmem>>, vector<1x32xbf16>
    %47 = arith.extf %46 : vector<1x32xbf16> to vector<1x32xf32>
    %48 = vector.broadcast %47 : vector<1x32xf32> to vector<16x32xf32>
    %49 = arith.addf %45, %48 : vector<16x32xf32>
    %50 = arith.addf %49, %1 : vector<16x32xf32>
    %51 = arith.truncf %50 : vector<16x32xf32> to vector<16x32xbf16>
    %c0_25 = arith.constant 0 : index
    %c0_26 = arith.constant 0 : index
    %52 = vector.load %arg8[%c0_25, %c0_26] : memref<16x32xbf16, #tpu.memory_space<vmem>>, vector<16x32xbf16>
    tpu.vector_store %arg8[%c0_25, %c0_26], %51 {strides = array<i32>} : memref<16x32xbf16, #tpu.memory_space<vmem>>, vector<16x32xbf16>,
    return
  }
  func.func @transform_0(%arg0: i32) -> (i32, i32) {
    %c0_i32 = arith.constant 0 : i32
    %c0_i32_0 = arith.constant 0 : i32
    return %arg0, %c0_i32 : i32, i32
  }
  func.func @transform_1(%arg0: i32) -> (i32, i32) {
    %c0_i32 = arith.constant 0 : i32
    %c0_i32_0 = arith.constant 0 : i32
    %c0_i32_1 = arith.constant 0 : i32
    return %c0_i32, %c0_i32_0 : i32, i32
  }
  func.func @transform_2(%arg0: i32) -> (i32, i32) {
    %c0_i32 = arith.constant 0 : i32
    %c0_i32_0 = arith.constant 0 : i32
    %c0_i32_1 = arith.constant 0 : i32
    return %c0_i32, %c0_i32_0 : i32, i32
  }
  func.func @transform_3(%arg0: i32) -> (i32, i32) {
    %c0_i32 = arith.constant 0 : i32
    %c0_i32_0 = arith.constant 0 : i32
    %c0_i32_1 = arith.constant 0 : i32
    return %c0_i32, %c0_i32_0 : i32, i32
  }
  func.func @transform_4(%arg0: i32) -> (i32, i32) {
    %c0_i32 = arith.constant 0 : i32
    %c0_i32_0 = arith.constant 0 : i32
    %c0_i32_1 = arith.constant 0 : i32
    return %c0_i32, %c0_i32_0 : i32, i32
  }
  func.func @transform_5(%arg0: i32) -> (i32, i32) {
    %c0_i32 = arith.constant 0 : i32
    %c0_i32_0 = arith.constant 0 : i32
    %c0_i32_1 = arith.constant 0 : i32
    return %c0_i32, %c0_i32_0 : i32, i32
  }
  func.func @transform_6(%arg0: i32) -> (i32, i32) {
    %c0_i32 = arith.constant 0 : i32
    %c0_i32_0 = arith.constant 0 : i32
    %c0_i32_1 = arith.constant 0 : i32
    return %c0_i32, %c0_i32_0 : i32, i32
  }
  func.func @transform_7(%arg0: i32) -> (i32, i32) {
    %c0_i32 = arith.constant 0 : i32
    %c0_i32_0 = arith.constant 0 : i32
    return %arg0, %c0_i32 : i32, i32
  }
}

module attributes {stable_mosaic.version = 11 : i64} {
  func.func @_ln_linear_kernel(%arg0: i32, %arg1: memref<8x32xbf16, #tpu.memory_space<vmem>>, %arg2: memref<1x32xbf16, #tpu.memory_space<vmem>>, %arg3: memref<1x32xbf16, #tpu.memory_space<vmem>>, %arg4: memref<32x32xbf16, #tpu.memory_space<vmem>>, %arg5: memref<8x32xbf16, #tpu.memory_space<vmem>>) attributes {dimension_semantics = [#tpu.dimension_semantics<parallel>], iteration_bounds = array<i64: 1>, scalar_prefetch = 0 : i64, scratch_operands = 0 : i64, tpu.core_type = #tpu.core_type<tc>, window_params = [{transform_indices = @transform_0, window_bounds = array<i64: 8, 32>}, {pipeline_mode = #tpu.pipeline_mode<synchronous>, transform_indices = @transform_1, window_bounds = array<i64: 1, 32>}, {pipeline_mode = #tpu.pipeline_mode<synchronous>, transform_indices = @transform_2, window_bounds = array<i64: 1, 32>}, {pipeline_mode = #tpu.pipeline_mode<synchronous>, transform_indices = @transform_3, window_bounds = array<i64: 32, 32>}, {transform_indices = @transform_4, window_bounds = array<i64: 8, 32>}]} {
    %c0 = arith.constant 0 : index
    %c0_0 = arith.constant 0 : index
    %0 = vector.load %arg1[%c0, %c0_0] : memref<8x32xbf16, #tpu.memory_space<vmem>>, vector<8x32xbf16>
    %1 = arith.extf %0 : vector<8x32xbf16> to vector<8x32xf32>
    %cst = arith.constant dense<0.000000e+00> : vector<8xf32>
    %2 = vector.multi_reduction <add>, %1, %cst [1] : vector<8x32xf32> to vector<8xf32>
    %3 = vector.shape_cast %2 : vector<8xf32> to vector<8x1xf32>
    %cst_1 = arith.constant 3.200000e+01 : f32
    %4 = vector.broadcast %cst_1 : f32 to vector<8x1xf32>
    %5 = arith.divf %3, %4 : vector<8x1xf32>
    %6 = vector.broadcast %5 : vector<8x1xf32> to vector<8x32xf32>
    %7 = arith.subf %1, %6 : vector<8x32xf32>
    %8 = arith.mulf %7, %7 : vector<8x32xf32>
    %cst_2 = arith.constant dense<0.000000e+00> : vector<8xf32>
    %9 = vector.multi_reduction <add>, %8, %cst_2 [1] : vector<8x32xf32> to vector<8xf32>
    %10 = vector.shape_cast %9 : vector<8xf32> to vector<8x1xf32>
    %cst_3 = arith.constant 3.200000e+01 : f32
    %11 = vector.broadcast %cst_3 : f32 to vector<8x1xf32>
    %12 = arith.divf %10, %11 : vector<8x1xf32>
    %cst_4 = arith.constant 9.99999974E-6 : f32
    %13 = vector.broadcast %cst_4 : f32 to vector<8x1xf32>
    %14 = arith.addf %12, %13 : vector<8x1xf32>
    %15 = math.rsqrt %14 : vector<8x1xf32>
    %16 = vector.broadcast %15 : vector<8x1xf32> to vector<8x32xf32>
    %17 = arith.mulf %7, %16 : vector<8x32xf32>
    %c0_5 = arith.constant 0 : index
    %c0_6 = arith.constant 0 : index
    %18 = vector.load %arg2[%c0_5, %c0_6] : memref<1x32xbf16, #tpu.memory_space<vmem>>, vector<1x32xbf16>
    %19 = arith.extf %18 : vector<1x32xbf16> to vector<1x32xf32>
    %20 = vector.broadcast %19 : vector<1x32xf32> to vector<8x32xf32>
    %21 = arith.mulf %17, %20 : vector<8x32xf32>
    %c0_7 = arith.constant 0 : index
    %c0_8 = arith.constant 0 : index
    %22 = vector.load %arg3[%c0_7, %c0_8] : memref<1x32xbf16, #tpu.memory_space<vmem>>, vector<1x32xbf16>
    %23 = arith.extf %22 : vector<1x32xbf16> to vector<1x32xf32>
    %24 = vector.broadcast %23 : vector<1x32xf32> to vector<8x32xf32>
    %25 = arith.addf %21, %24 : vector<8x32xf32>
    %26 = arith.truncf %25 : vector<8x32xf32> to vector<8x32xbf16>
    %c0_9 = arith.constant 0 : index
    %c0_10 = arith.constant 0 : index
    %27 = vector.load %arg4[%c0_9, %c0_10] : memref<32x32xbf16, #tpu.memory_space<vmem>>, vector<32x32xbf16>
    %cst_11 = arith.constant dense<0.000000e+00> : vector<8x32xf32>
    %28 = tpu.matmul %26, %27, %cst_11 {dimension_numbers = #tpu.dot_dimension_numbers<[1], [0], [0], [1], [0, 0, 1, 1], [], []>} : vector<8x32xbf16>, vector<32x32xbf16>, vector<8x32xf32> -> vector<8x32xf32>
    %29 = arith.truncf %28 : vector<8x32xf32> to vector<8x32xbf16>
    %c0_12 = arith.constant 0 : index
    %c0_13 = arith.constant 0 : index
    %30 = vector.load %arg5[%c0_12, %c0_13] : memref<8x32xbf16, #tpu.memory_space<vmem>>, vector<8x32xbf16>
    tpu.vector_store %arg5[%c0_12, %c0_13], %29 {strides = array<i32>} : memref<8x32xbf16, #tpu.memory_space<vmem>>, vector<8x32xbf16>,
    return
  }
  func.func @transform_0(%arg0: i32) -> (i32, i32) {
    %c0_i32 = arith.constant 0 : i32
    %c0_i32_0 = arith.constant 0 : i32
    return %arg0, %c0_i32 : i32, i32
  }
  func.func @transform_1(%arg0: i32) -> (i32, i32) {
    %c0_i32 = arith.constant 0 : i32
    %c0_i32_0 = arith.constant 0 : i32
    %c0_i32_1 = arith.constant 0 : i32
    return %c0_i32, %c0_i32_0 : i32, i32
  }
  func.func @transform_2(%arg0: i32) -> (i32, i32) {
    %c0_i32 = arith.constant 0 : i32
    %c0_i32_0 = arith.constant 0 : i32
    %c0_i32_1 = arith.constant 0 : i32
    return %c0_i32, %c0_i32_0 : i32, i32
  }
  func.func @transform_3(%arg0: i32) -> (i32, i32) {
    %c0_i32 = arith.constant 0 : i32
    %c0_i32_0 = arith.constant 0 : i32
    %c0_i32_1 = arith.constant 0 : i32
    return %c0_i32, %c0_i32_0 : i32, i32
  }
  func.func @transform_4(%arg0: i32) -> (i32, i32) {
    %c0_i32 = arith.constant 0 : i32
    %c0_i32_0 = arith.constant 0 : i32
    return %arg0, %c0_i32 : i32, i32
  }
}

</mosaic_0001>

<bundles_post_ra>
// kernel: text_encoder_forward.7
= control target key start
LH: loop header
LB: loop body
LE: loop exit
PB: predicated region body
PF: predicated region fallthrough
CT: control target
= control target key end

     0   :  { %vm25_vm0 = vcmask 261120   ;;  %v181_v15 = vmov 0.0   ;;  %vm182_vm1 = vmmov 0   ;;  %v55_v24 = vlaneseq  ;;  %s242_s0 = inlined_call_operand.vmem [shape: bf16[16,32], index: 0, kind: input, shape index: {}]   ;;  %s243_s3 = inlined_call_operand.vmem [shape: bf16[32,96], index: 3, kind: input, shape index: {}]   ;;  %s244_s1 = inlined_call_operand.vmem [shape: bf16[1,32], index: 1, kind: input, shape index: {}]   ;;  %s245_s2 = inlined_call_operand.vmem [shape: bf16[1,32], index: 2, kind: input, shape index: {}]   ;;  %s246_s4 = inlined_call_operand.vmem [shape: bf16[1,96], index: 4, kind: input, shape index: {}]   ;;  %s247_s5 = inlined_call_operand.vmem [shape: bf16[16,96], index: 5, kind: output, shape index: {}]  }
   0x1   :  { %v159_v0 = vld [vmem:[%s242_s0] sm:$0xff]   ;;  %165 = vmatprep.subr.bf16.mxu0 %v181_v15  ;;  %v175_v16 = vld [vmem:[%s243_s3 + $0x8] sm:$0xff]   ;;  %169 = vmatprep.mubr.msk.bf16.mxu0 %vm182_vm1, %v181_v15  ;;  %vm144_vm2 = vcmask 781312  }
   0x2   :  { %v160_v1 = vunpack.c.l.bf16 %v159_v0  ;;  %v161_v2 = vunpack.c.h.bf16 %v159_v0  ;;  %166 = vmatpush3.bf16.msra.mxu0 %v175_v16  ;;  %v176_v17 = vld [vmem:[%s243_s3] sm:$0xff]   ;;  %v56_v25 = vshrl.u32 %v55_v24, 7 }
   0x3   :  { %167 = vmatprep.subr.bf16.mxu0 %v181_v15  ;;  %v53_v26 = vld [vmem:[%s244_s1] sm:$0x1] }
   0x4   :  { %v26_v3 = vsel %vm25_vm0, %v160_v1, 0.0  ;;  %v29_v4 = vsel %vm25_vm0, %v161_v2, 0.0  ;;  %v54_v27 = vunpack.c.l.bf16 %v53_v26  ;;  %v57_v28 = vsub.s32 0, %v56_v25  ;;  %v61_v29 = vld [vmem:[%s245_s2] sm:$0x1] }
   0x5   :  { %27 = vadd.xlane.f32.xlu0 %v26_v3  ;;  %v62_v33 = vunpack.c.l.bf16 %v61_v29  ;;  %v74_v42 = vld [vmem:[%s246_s4] sm:$0x1] }
   0x6   :  { %168 = vmatpush3.bf16.msra.mxu0 %v176_v17  ;;  %v58_v32 = vrot.slane %v54_v27, %v57_v28  ;;  %v75_v43 = vunpack.c.l.bf16 %v74_v42 }
   0x7   :  { %v66_v37 = vrot.slane %v62_v33, %v57_v28 }
   0x8   :  { %v79_v44 = vrot.slane %v75_v43, %v57_v28 }
   0x9   :  { %30 = vadd.xlane.f32.xlu0 %v29_v4 }
  0x8e   :  { %v28_v5 = vpop.xlane.xlu0 %27 }
  0x8f   :  { %v33_v6 = vmul.f32 0.03125, %v28_v5 }
  0x91   :  { %v35_v7 = vsub.f32 %v160_v1, %v33_v6 }
  0x92   :  { %v31_v8 = vpop.xlane.xlu0 %30 }
  0x93   :  { %v34_v9 = vmul.f32 0.03125, %v31_v8  ;;  %v37_v10 = vmul.f32 %v35_v7, %v35_v7 }
  0x95   :  { %v36_v11 = vsub.f32 %v161_v2, %v34_v9  ;;  %v39_v12 = vsel %vm25_vm0, %v37_v10, 0.0 }
  0x96   :  { %40 = vadd.xlane.f32.xlu1 %v39_v12 }
  0x97   :  { %v38_v13 = vmul.f32 %v36_v11, %v36_v11 }
  0x99   :  { %v42_v14 = vsel %vm25_vm0, %v38_v13, 0.0 }
  0x9a   :  { %43 = vadd.xlane.f32.xlu1 %v42_v14 }
 0x11f   :  { %v41_v18 = vpop.xlane.xlu1 %40 }
 0x120   :  { %v45_v19 = vmul.f32 0.03125, %v41_v18 }
 0x122   :  { %v47_v20 = vadd.f32 1e-05, %v45_v19 }
 0x123   :  { %v44_v21 = vpop.xlane.xlu1 %43 }
 0x124   :  { %177 = vrsqrt.f32 %v47_v20  ;;  %v46_v22 = vmul.f32 0.03125, %v44_v21 }
 0x126   :  { %v48_v23 = vadd.f32 1e-05, %v46_v22 }
 0x128   :  { %179 = vrsqrt.f32 %v48_v23 }
 0x131   :  { %v178_v30 = vpop.eup %177 }
 0x132   :  { %v51_v31 = vmul.f32 %v178_v30, %v35_v7 }
 0x134   :  { %v59_v36 = vmul.f32 %v58_v32, %v51_v31 }
 0x135   :  { %v180_v34 = vpop.eup %179 }
 0x136   :  { %v52_v35 = vmul.f32 %v180_v34, %v36_v11  ;;  %v67_v39 = vadd.f32 %v66_v37, %v59_v36 }
 0x138   :  { %v60_v38 = vmul.f32 %v58_v32, %v52_v35 }
 0x13a   :  { %v68_v40 = vadd.f32 %v66_v37, %v60_v38 }
 0x13c   :  { %v69_v41 = vpack.c.bf16 %v68_v40, %v67_v39 }
 0x13e   :  { %170 = vmatmul.mubr.msk.bf16.vlgmr.msra.gmra.mxu0 %vm25_vm0, %v69_v41 }
 0x1fe   :  { %v129_v45 = vpop.f32.mrf.mxu0 }
 0x1ff   :  { %v130_v46 = vadd.f32 %v129_v45, %v79_v44 }
 0x200   :  { %v171_v47 = vpop.f32.mrf.mxu0 }
 0x201   :  { %v156_v48 = vpack.c.bf16 %v130_v46, %v130_v46 }
 0x202   :  { %v132_v49 = vpop.f32.mrf.mxu0 }
 0x203   :  { %145 = vst.msk [vmem:[%s247_s5] sm:$0xf] %vm144_vm2, %v156_v48  ;;  %v133_v50 = vadd.f32 %v132_v49, %v79_v44 }
 0x204   :  { %v172_v51 = vpop.f32.mrf.mxu0 }
 0x205   :  { %v157_v52 = vpack.c.bf16 %v133_v50, %v133_v50 }
 0x207   :  { %146 = vst.msk [vmem:[%s247_s5 + $0x4] sm:$0xf] %vm144_vm2, %v157_v52 }

// kernel: text_encoder_forward.8
= control target key start
LH: loop header
LB: loop body
LE: loop exit
PB: predicated region body
PF: predicated region fallthrough
CT: control target
= control target key end

     0   :  { %s1256_s15 = smov 0   ;;  %s1371_s0 = inlined_call_operand.vmem [shape: bf16[2,8,96], index: 0, kind: input, shape index: {}]   ;;  %s1372_s1 = inlined_call_operand.vmem [shape: bf16[32,32], index: 1, kind: input, shape index: {}]   ;;  %s1373_s2 = inlined_call_operand.vmem [shape: bf16[1,32], index: 2, kind: input, shape index: {}]   ;;  %s1374_s3 = inlined_call_operand.vmem [shape: bf16[2,8,32], index: 3, kind: input, shape index: {}]   ;;  %s1375_s4 = inlined_call_operand.vmem [shape: bf16[2,8,32], index: 4, kind: output, shape index: {}]  }
   0x1 LB: > { %s1067_s16 = sadd.s32 4294967295, %s1213_s15   ;;  %p1071_p0 = scmp.ge.s32.totalorder %s1213_s15, 1  ;;  %s1213_s15 = sphi %s1256_s15, %s14_s15  }
   0x2   : > { %p170_p1 = scmp.lt.s32.totalorder %s1213_s15, 3 }
   0x4   : > { %p171_p2 = pnand %p1071_p0, %p170_p1 }
   0x5   : > { %p198_p3 = scmp.lt.s32.totalorder (!%p171_p2), %s1067_s16, 1  ;;  %s1217_s21 = smov (!%p171_p2), 96  }
   0x6   : > { %174 = sbr.rel (%p171_p2) target bundleno = 1673 (0x689), region = 36  ;;  %s1218_s22 = smov (!%p171_p2), 88  }
   0x7   : > { %s1219_s23 = smov (!%p171_p2), 64   ;;  %s1220_s24 = smov (!%p171_p2), 120  }
   0x8   : > { %s1221_s25 = smov (!%p171_p2), 80   ;;  %s1222_s26 = smov (!%p171_p2), 112  }
   0x9   : > { %s1223_s27 = smov (!%p171_p2), 72   ;;  %s1224_s28 = smov (!%p171_p2), 104  }
   0xa   : > { %s1225_s29 = smov (!%p171_p2), 56   ;;  %s1226_s30 = smov (!%p171_p2), 40  }
   0xb   : > { %v1215_v0 = vmov 0.0   ;;  %vm1216_vm0 = vmmov 0   ;;  %s1377_s16 = smov (!%p198_p3, %s1067_s16), 1  ;;  %vm222_vm1 = vcmask 64512   ;;  %v211_v14 = vlaneseq  ;;  %s1227_s5 = smov 48  }
   0xc   : > { %1117 = vmatprep.subr.mxu0 %v1215_v0  ;;  %1119 = vmatprep.mubr.msk.f32.mxu0 %vm1216_vm0, %v1215_v0  ;;  %s1270_s17 = sshll.u32 %s1377_s16, 2  ;;  %vm387_vm3 = vcmask 60416   ;;  %s1228_s6 = smov 8   ;;  %vm567_vm4 = vcmask 126016   ;;  %vm747_vm5 = vcmask 191616   ;;  %vm927_vm6 = vcmask 257216  }
   0xd   : > { %1122 = vmatprep.subr.mxu1 %v1215_v0  ;;  %1124 = vmatprep.mubr.msk.f32.mxu1 %vm1216_vm0, %v1215_v0  ;;  %s1276_s20 = scalar_lea.vmem %s1371_s0, %s1270_s17  ;;  %v1300_v15 = vshrl.u32 %v211_v14, 7  ;;  %v214_v16 = vand.u32 127, %v211_v14  ;;  %s1229_s11 = smov 16   ;;  %vm952_vm7 = vcmask 261120   ;;  %vm1000_vm8 = vcmask 257024  }
   0xe   : > { %v216_v1 = vld [vmem:[%s1276_s20] sm:$0xf]  ;;  %s1230_s12 = smov 24   ;;  %s205_s19 = scalar_lea.vmem %s1374_s3, %s1270_s17 }
   0xf   : > { %v389_v2 = vld [vmem:[%s1276_s20] sm:$0xf]  ;;  %v217_v3 = vunpack.c.l.bf16 %v216_v1  ;;  %vm215_vm2 = vcmp.le.s32.totalorder %v214_v16, %v1300_v15 }
  0x10   : > { %v1280_v4 = vunpack.c.l.bf16 %v389_v2  ;;  %v569_v9 = vld [vmem:[%s1276_s20] sm:$0xf] }
  0x11   : > { %220 = vrot.lane.b32.xlu0 %v217_v3, %s1217_s21  ;;  %v218_v7 = vmul.f32 0.35355338, %v217_v3  ;;  %v1291_v10 = vunpack.c.l.bf16 %v569_v9  ;;  %v749_v21 = vld [vmem:[%s1276_s20] sm:$0xf] }
  0x12   : > { %396 = vrot.lane.b32.xlu1 %v1280_v4, %s1218_s22  ;;  %v391_v5 = vmul.f32 0.35355338, %v1280_v4  ;;  %v1307_v22 = vunpack.c.l.bf16 %v749_v21  ;;  %v1190_v21 = vld [vmem:[%s1372_s1] sm:$0xff]   ;;  %s209_s22 = scalar_lea.vmem %s1375_s4, %s1270_s17 }
  0x13   : > { %v571_v11 = vmul.f32 0.35355338, %v1291_v10 }
  0x14   : > { %v751_v30 = vmul.f32 0.35355338, %v1307_v22 }
  0x16   : > { %310 = vrot.lane.b32.xlu1 %v217_v3, %s1219_s23 }
  0x1a   : > { %393 = vrot.lane.b32.xlu1 %v391_v5, %s1220_s24 }
  0x1e   : > { %576 = vrot.lane.b32.xlu1 %v1291_v10, %s1221_s25 }
  0x22   : > { %573 = vrot.lane.b32.xlu1 %v571_v11, %s1222_s26 }
  0x83   : > { %v221_v6 = vpop.permute.xlu0 %220 }
  0x84   : > { %1118 = vmatpush3.xpose.msk.msra.mxu0 %vm222_vm1, %v221_v6  ;;  %v397_v8 = vpop.permute.xlu1 %396 }
  0x85   : > { %1127 = vmatprep.subr.mxu0 %v1215_v0 }
  0x87   : > { %1120 = vmatmul.mubr.msk.f32.vlgmr.msra.gmra.mxu0 %vm222_vm1, %v218_v7 }
  0x88   : > { %1129 = vmatprep.mubr.msk.f32.mxu0 %vm1216_vm0, %v1215_v0  ;;  %1128 = vmatpush3.xpose.msk.msra.mxu0 %vm222_vm1, %v397_v8  ;;  %v311_v12 = vpop.permute.xlu1 %310 }
  0x89   : > { %1132 = vmatprep.subr.mxu0 %v1215_v0  ;;  %1123 = vmatpush3.msra.mxu1 %v311_v12 }
  0x8a   : > { %1137 = vmatprep.subr.mxu1 %v1215_v0 }
  0x8c   : > { %v394_v13 = vpop.permute.xlu1 %393 }
  0x8d   : > { %1130 = vmatmul.mubr.msk.f32.vlgmr.msra.gmra.mxu0 %vm222_vm1, %v394_v13 }
  0x8e   : > { %1134 = vmatprep.mubr.msk.f32.mxu0 %vm1216_vm0, %v1215_v0 }
  0x90   : > { %v577_v33 = vpop.permute.xlu1 %576 }
  0x94   : > { %v574_v34 = vpop.permute.xlu1 %573 }
 0x147   : > { %v294_v17 = vpop.f32.mrf.mxu0 }
 0x148   : > { %v298_v18 = vsel %vm215_vm2, %v294_v17, -1e+30 }
 0x149   : > { %v1121_v19 = vpop.f32.mrf.mxu0  ;;  %v299_v20 = vsel %vm222_vm1, %v298_v18, -inf }
 0x14a   : > { %300 = vmax.xlane.f32.xlu0 %v299_v20  ;;  %v1189_v20 = vld [vmem:[%s1372_s1 + $0x8] sm:$0xff]  }
 0x14d   : > { %v468_v23 = vpop.f32.mrf.mxu0 }
 0x14e   : > { %v472_v31 = vsel %vm215_vm2, %v468_v23, -1e+30 }
 0x14f   : > { %v1131_v24 = vpop.f32.mrf.mxu0  ;;  %v473_v32 = vsel %vm222_vm1, %v472_v31, -inf }
 0x160   : > { %756 = vrot.lane.b32.xlu0 %v1307_v22, %s1223_s27 }
 0x1d3   : > { %v301_v25 = vpop.xlane.xlu0 %300 }
 0x1d4   : > { %v302_v26 = vsub.f32 %v298_v18, %v301_v25 }
 0x1d6   : > { %v303_v27 = vmul.f32 1.442695, %v302_v26 }
 0x1d7   : > { %v757_v38 = vpop.permute.xlu0 %756 }
 0x1d8   : > { %1191 = vpow2.f32 %v303_v27 }
 0x1e5   : > { %v1192_v28 = vpop.eup %1191 }
 0x1e6   : > { %v305_v29 = vsel %vm222_vm1, %v1192_v28, 0.0 }
 0x1e7   : > { %306 = vadd.xlane.f32.xlu1 %v305_v29 }
 0x1f8   : > { %753 = vrot.lane.b32.xlu1 %v751_v30, %s1224_s28  ;;  %v934_v30 = vld [vmem:[%s1373_s2] sm:$0x1] }
 0x21c   : > { %474 = vmax.xlane.f32.xlu1 %v473_v32  ;;  %v938_v32 = vsub.s32 0, %v1300_v15 }
 0x270   : > { %v307_v35 = vpop.xlane.xlu1 %306 }
 0x271   : > { %1193 = vrcp.f32 %v307_v35 }
 0x274   : > { %v754_v39 = vpop.permute.xlu1 %753 }
 0x27e   : > { %v1194_v36 = vpop.eup %1193 }
 0x27f   : > { %v309_v37 = vmul.f32 %v1194_v36, %v1192_v28 }
 0x281   : > { %1125 = vmatmul.mubr.msk.f32.vlgmr.msra.gmra.mxu1 %vm222_vm1, %v309_v37 }
 0x282   : > { %1138 = vmatpush3.xpose.msk.msra.mxu1 %vm222_vm1, %v577_v33  ;;  %1139 = vmatprep.mubr.msk.f32.mxu1 %vm1216_vm0, %v1215_v0  ;;  %v996_v33 = vld [vmem:[%s205_s19] sm:$0xf] }
 0x283   : > { %1147 = vmatprep.subr.mxu1 %v1215_v0  ;;  %v997_v35 = vunpack.c.l.bf16 %v996_v33 }
 0x285   : > { %1140 = vmatmul.mubr.msk.f32.vlgmr.msra.gmra.mxu1 %vm222_vm1, %v574_v34 }
 0x286   : > { %1148 = vmatpush3.xpose.msk.msra.mxu1 %vm222_vm1, %v757_v38  ;;  %1149 = vmatprep.mubr.msk.f32.mxu1 %vm1216_vm0, %v1215_v0 }
 0x287   : > { %1157 = vmatprep.subr.bf16.mxu1 %v1215_v0 }
 0x289   : > { %1150 = vmatmul.mubr.msk.f32.vlgmr.msra.gmra.mxu1 %vm222_vm1, %v754_v39 }
 0x28a   : > { %1161 = vmatprep.mubr.msk.bf16.mxu1 %vm1216_vm0, %v1215_v0  ;;  %1158 = vmatpush3.bf16.msra.mxu1 %v1189_v20 }
 0x28b   : > { %1159 = vmatprep.subr.bf16.mxu1 %v1215_v0 }
 0x28e   : > { %1160 = vmatpush3.bf16.msra.mxu1 %v1190_v21 }
 0x2a5   : > { %v475_v40 = vpop.xlane.xlu1 %474 }
 0x2a6   : > { %v476_v41 = vsub.f32 %v472_v31, %v475_v40  ;;  %v935_v31 = vunpack.c.l.bf16 %v934_v30 }
 0x2a8   : > { %v477_v42 = vmul.f32 1.442695, %v476_v41  ;;  %v939_v34 = vrot.slane %v935_v31, %v938_v32 }
 0x2aa   : > { %1195 = vpow2.f32 %v477_v42 }
 0x2b7   : > { %v1196_v54 = vpop.eup %1195 }
 0x2b8   : > { %v479_v55 = vsel %vm222_vm1, %v1196_v54, 0.0 }
 0x341   : > { %v382_v43 = vpop.f32.mrf.mxu1 }
 0x342   : > { %v386_v44 = vpack.c.bf16 %v382_v43, %v382_v43 }
 0x343   : > { %v1126_v45 = vpop.f32.mrf.mxu1 }
 0x344   : > { %388 = vst.msk [vmem:[#allocation2] sm:$0xf] %vm387_vm3, %v386_v44 }
 0x345   : > { %v648_v46 = vpop.f32.mrf.mxu1 }
 0x346   : > { %v652_v47 = vsel %vm215_vm2, %v648_v46, -1e+30 }
 0x347   : > { %v1141_v48 = vpop.f32.mrf.mxu1  ;;  %v653_v49 = vsel %vm222_vm1, %v652_v47, -inf }
 0x348   : > { %654 = vmax.xlane.f32.xlu0 %v653_v49 }
 0x349   : > { %v828_v50 = vpop.f32.mrf.mxu1 }
 0x34a   : > { %v832_v51 = vsel %vm215_vm2, %v828_v50, -1e+30 }
 0x34b   : > { %v1151_v52 = vpop.f32.mrf.mxu1  ;;  %v833_v53 = vsel %vm222_vm1, %v832_v51, -inf }
 0x34c   : > { %834 = vmax.xlane.f32.xlu1 %v833_v53 }
 0x350   : > { %480 = vadd.xlane.f32.xlu1 %v479_v55 }
 0x361   : > { %484 = vrot.lane.b32.xlu1 %v1280_v4, %s1225_s29 }
 0x3d1   : > { %v655_v56 = vpop.xlane.xlu0 %654 }
 0x3d2   : > { %v656_v57 = vsub.f32 %v652_v47, %v655_v56 }
 0x3d4   : > { %v657_v58 = vmul.f32 1.442695, %v656_v57 }
 0x3d5   : > { %v835_v59 = vpop.xlane.xlu1 %834 }
 0x3d6   : > { %1197 = vpow2.f32 %v657_v58  ;;  %v836_v60 = vsub.f32 %v832_v51, %v835_v59 }
 0x3d8   : > { %v837_v61 = vmul.f32 1.442695, %v836_v60 }
 0x3d9   : > { %v481_v62 = vpop.xlane.xlu1 %480 }
 0x3da   : > { %1199 = vpow2.f32 %v837_v61 }
 0x3db   : > { %1201 = vrcp.f32 %v481_v62 }
 0x3dd   : > { %v485_v63 = vpop.permute.xlu1 %484 }
 0x3de   : > { %1133 = vmatpush3.msra.mxu0 %v485_v63 }
 0x3df   : > { %1142 = vmatprep.subr.mxu0 %v1215_v0 }
 0x3e3   : > { %v1198_v1 = vpop.eup %1197 }
 0x3e4   : > { %v659_v2 = vsel %vm222_vm1, %v1198_v1, 0.0 }
 0x3e5   : > { %660 = vadd.xlane.f32.xlu1 %v659_v2 }
 0x3e7   : > { %v1200_v3 = vpop.eup %1199 }
 0x3e8   : > { %v1202_v4 = vpop.eup %1201  ;;  %v839_v5 = vsel %vm222_vm1, %v1200_v3, 0.0 }
 0x3e9   : > { %840 = vadd.xlane.f32.xlu0 %v839_v5  ;;  %v483_v6 = vmul.f32 %v1202_v4, %v1196_v54 }
 0x3eb   : > { %1135 = vmatmul.mubr.msk.f32.vlgmr.msra.gmra.mxu0 %vm222_vm1, %v483_v6 }
 0x3ec   : > { %1144 = vmatprep.mubr.msk.f32.mxu0 %vm1216_vm0, %v1215_v0 }
 0x3f6   : > { %844 = vrot.lane.b32.xlu1 %v1307_v22, %s1226_s30 }
 0x3ff   : > { %664 = vrot.lane.b32.xlu0 %v1291_v10, %s1227_s5 }
 0x46e   : > { %v661_v7 = vpop.xlane.xlu1 %660 }
 0x46f   : > { %1203 = vrcp.f32 %v661_v7 }
 0x472   : > { %v841_v8 = vpop.xlane.xlu0 %840  ;;  %v845_v12 = vpop.permute.xlu1 %844 }
 0x473   : > { %1205 = vrcp.f32 %v841_v8 }
 0x476   : > { %v665_v9 = vpop.permute.xlu0 %664 }
 0x477   : > { %1143 = vmatpush3.msra.mxu0 %v665_v9 }
 0x478   : > { %1152 = vmatprep.subr.mxu0 %v1215_v0 }
 0x47c   : > { %v1204_v11 = vpop.eup %1203 }
 0x47d   : > { %v663_v13 = vmul.f32 %v1204_v11, %v1198_v1 }
 0x47f   : > { %1145 = vmatmul.mubr.msk.f32.vlgmr.msra.gmra.mxu0 %vm222_vm1, %v663_v13 }
 0x480   : > { %v1206_v14 = vpop.eup %1205  ;;  %1153 = vmatpush3.msra.mxu0 %v845_v12  ;;  %1154 = vmatprep.mubr.msk.f32.mxu0 %vm1216_vm0, %v1215_v0 }
 0x481   : > { %v843_v16 = vmul.f32 %v1206_v14, %v1200_v3 }
 0x483   : > { %1155 = vmatmul.mubr.msk.f32.vlgmr.msra.gmra.mxu0 %vm222_vm1, %v843_v16 }
 0x4ab   : > { %v556_v10 = vpop.f32.mrf.mxu0 }
 0x4ac   : > { %v1095_v17 = vpack.c.bf16 %v556_v10, %v556_v10 }
 0x4ad   : > { %v1136_v18 = vpop.f32.mrf.mxu0 }
 0x4ae   : > { %564 = vrot.lane.b32.xlu1 %v1095_v17, %s1228_s6 }
 0x520   : > { %v565_v19 = vpop.permute.xlu1 %564 }
 0x521   : > { %568 = vst.msk [vmem:[#allocation2] sm:$0xf] %vm567_vm4, %v565_v19 }
 0x53f   : > { %v736_v22 = vpop.f32.mrf.mxu0 }
 0x540   : > { %v1096_v23 = vpack.c.bf16 %v736_v22, %v736_v22 }
 0x541   : > { %v1146_v24 = vpop.f32.mrf.mxu0 }
 0x542   : > { %744 = vrot.lane.b32.xlu0 %v1096_v23, %s1229_s11 }
 0x543   : > { %v916_v25 = vpop.f32.mrf.mxu0 }
 0x544   : > { %v1097_v26 = vpack.c.bf16 %v916_v25, %v916_v25 }
 0x545   : > { %v1156_v27 = vpop.f32.mrf.mxu0 }
 0x546   : > { %924 = vrot.lane.b32.xlu1 %v1097_v26, %s1230_s12 }
 0x5b4   : > { %v745_v28 = vpop.permute.xlu0 %744 }
 0x5b5   : > { %748 = vst.msk [vmem:[#allocation2] sm:$0xf] %vm747_vm5, %v745_v28 }
 0x5b8   : > { %v925_v29 = vpop.permute.xlu1 %924 }
 0x5b9   : > { %928 = vst.msk [vmem:[#allocation2] sm:$0xf] %vm927_vm6, %v925_v29 }
 0x5c0   : > { %v929_v0 = vld [vmem:[#allocation2] sm:$0xf] }
 0x5c1   : > { %1162 = vmatmul.mubr.msk.bf16.vlgmr.msra.gmra.mxu1 %vm952_vm7, %v929_v0 }
 0x681   : > { %v990_v36 = vpop.f32.mrf.mxu1 }
 0x682   : > { %v991_v37 = vadd.f32 %v990_v36, %v939_v34 }
 0x683   : > { %v1163_v38 = vpop.f32.mrf.mxu1 }
 0x684   : > { %v998_v39 = vadd.f32 %v997_v35, %v991_v37 }
 0x685   : > { %v993_v40 = vpop.f32.mrf.mxu1 }
 0x686   : > { %v999_v41 = vpack.c.bf16 %v998_v39, %v998_v39 }
 0x687   : > { %v1164_v42 = vpop.f32.mrf.mxu1 }
 0x688   : > { %1001 = vst.msk [vmem:[%s209_s22] sm:$0xf] %vm1000_vm8, %v999_v41 }
 0x689 PF: > { %s14_s15 = sadd.s32 1, %s1213_s15  }
 0x68a   : > { %p11_p4 = scmp.ge.s32.totalorder %s14_s15, 4  }
 0x68c   :  { %13 = sbr.rel (!%p11_p4) target bundleno = 1 (0x1), region = 69 }

// kernel: text_encoder_forward.9
= control target key start
LH: loop header
LB: loop body
LE: loop exit
PB: predicated region body
PF: predicated region fallthrough
CT: control target
= control target key end

     0   :  { %vm31_vm0 = vcmask 261120   ;;  %v400_v15 = vmov 0.0   ;;  %vm401_vm1 = vmmov 0   ;;  %v61_v24 = vlaneseq  ;;  %s514_s0 = inlined_call_operand.vmem [shape: bf16[16,32], index: 0, kind: input, shape index: {}]   ;;  %s515_s3 = inlined_call_operand.vmem [shape: bf16[32,128], index: 3, kind: input, shape index: {}]   ;;  %s516_s1 = inlined_call_operand.vmem [shape: bf16[1,32], index: 1, kind: input, shape index: {}]   ;;  %s517_s2 = inlined_call_operand.vmem [shape: bf16[1,32], index: 2, kind: input, shape index: {}]   ;;  %s518_s5 = inlined_call_operand.vmem [shape: bf16[128,32], index: 5, kind: input, shape index: {}]   ;;  %s519_s4 = inlined_call_operand.vmem [shape: bf16[1,128], index: 4, kind: input, shape index: {}]   ;;  %s520_s6 = inlined_call_operand.vmem [shape: bf16[1,32], index: 6, kind: input, shape index: {}]   ;;  %s521_s7 = inlined_call_operand.vmem [shape: bf16[16,32], index: 7, kind: output, shape index: {}]  }
   0x1   :  { %v327_v0 = vld [vmem:[%s514_s0] sm:$0xff]   ;;  %347 = vmatprep.subr.bf16.mxu0 %v400_v15  ;;  %v377_v16 = vld [vmem:[%s515_s3 + $0x8] sm:$0xff]   ;;  %351 = vmatprep.mubr.msk.bf16.mxu0 %vm401_vm1, %v400_v15  ;;  %v379_v42 = vld [vmem:[%s518_s5 + $0x38] sm:$0xff]   ;;  %vm297_vm2 = vcmask 257024  }
   0x2   :  { %v445_v1 = vunpack.c.l.bf16 %v327_v0  ;;  %v447_v2 = vunpack.c.h.bf16 %v327_v0  ;;  %355 = vmatprep.subr.bf16.mxu1 %v400_v15  ;;  %371 = vmatprep.mubr.msk.bf16.mxu1 %vm401_vm1, %v400_v15  ;;  %v378_v17 = vld [vmem:[%s515_s3] sm:$0xff]   ;;  %v62_v25 = vshrl.u32 %v61_v24, 7  ;;  %v380_v43 = vld [vmem:[%s518_s5 + $0x30] sm:$0xff]   ;;  %v381_v44 = vld [vmem:[%s518_s5 + $0x28] sm:$0xff]  }
   0x3   :  { %348 = vmatpush3.bf16.msra.mxu0 %v377_v16  ;;  %v59_v26 = vld [vmem:[%s516_s1] sm:$0x1]  ;;  %356 = vmatpush3.bf16.msra.mxu1 %v379_v42  ;;  %v383_v46 = vld [vmem:[%s518_s5 + $0x18] sm:$0xff]   ;;  %v384_v47 = vld [vmem:[%s518_s5 + $0x10] sm:$0xff]  }
   0x4   :  { %v32_v3 = vsel %vm31_vm0, %v445_v1, 0.0  ;;  %v35_v4 = vsel %vm31_vm0, %v447_v2, 0.0  ;;  %349 = vmatprep.subr.bf16.mxu0 %v400_v15  ;;  %v60_v27 = vunpack.c.l.bf16 %v59_v26  ;;  %v466_v28 = vsub.s32 0, %v62_v25  ;;  %v67_v29 = vld [vmem:[%s517_s2] sm:$0x1]  ;;  %357 = vmatprep.subr.bf16.mxu1 %v400_v15  ;;  %v385_v48 = vld [vmem:[%s518_s5 + $0x8] sm:$0xff]  }
   0x5   :  { %33 = vadd.xlane.f32.xlu0 %v32_v3  ;;  %v68_v33 = vunpack.c.l.bf16 %v67_v29  ;;  %v382_v45 = vld [vmem:[%s518_s5 + $0x20] sm:$0xff]  }
   0x6   :  { %v64_v32 = vrot.slane %v60_v27, %v466_v28  ;;  %v386_v49 = vld [vmem:[%s518_s5] sm:$0xff]  }
   0x7   :  { %350 = vmatpush3.bf16.msra.mxu0 %v378_v17  ;;  %v72_v37 = vrot.slane %v68_v33, %v466_v28  ;;  %358 = vmatpush3.bf16.msra.mxu1 %v380_v43  ;;  %v80_v50 = vld [vmem:[%s519_s4] sm:$0x1] }
   0x8   :  { %359 = vmatprep.subr.bf16.mxu1 %v400_v15  ;;  %v81_v51 = vunpack.c.l.bf16 %v80_v50 }
   0x9   :  { %36 = vadd.xlane.f32.xlu0 %v35_v4 }
   0xa   :  { %v85_v52 = vrot.slane %v81_v51, %v466_v28 }
   0xb   :  { %360 = vmatpush3.bf16.msra.mxu1 %v381_v44 }
   0xc   :  { %361 = vmatprep.subr.bf16.mxu1 %v400_v15 }
   0xf   :  { %362 = vmatpush3.bf16.msra.mxu1 %v382_v45 }
  0x10   :  { %363 = vmatprep.subr.bf16.mxu1 %v400_v15 }
  0x13   :  { %364 = vmatpush3.bf16.msra.mxu1 %v383_v46 }
  0x14   :  { %365 = vmatprep.subr.bf16.mxu1 %v400_v15 }
  0x17   :  { %366 = vmatpush3.bf16.msra.mxu1 %v384_v47 }
  0x18   :  { %367 = vmatprep.subr.bf16.mxu1 %v400_v15 }
  0x1b   :  { %368 = vmatpush3.bf16.msra.mxu1 %v385_v48 }
  0x1c   :  { %369 = vmatprep.subr.bf16.mxu1 %v400_v15 }
  0x1f   :  { %370 = vmatpush3.bf16.msra.mxu1 %v386_v49 }
  0x8e   :  { %v34_v5 = vpop.xlane.xlu0 %33 }
  0x8f   :  { %v39_v6 = vmul.f32 0.03125, %v34_v5 }
  0x91   :  { %v41_v7 = vsub.f32 %v445_v1, %v39_v6 }
  0x92   :  { %v37_v8 = vpop.xlane.xlu0 %36 }
  0x93   :  { %v40_v9 = vmul.f32 0.03125, %v37_v8  ;;  %v43_v10 = vmul.f32 %v41_v7, %v41_v7 }
  0x95   :  { %v42_v11 = vsub.f32 %v447_v2, %v40_v9  ;;  %v45_v12 = vsel %vm31_vm0, %v43_v10, 0.0 }
  0x96   :  { %46 = vadd.xlane.f32.xlu1 %v45_v12 }
  0x97   :  { %v44_v13 = vmul.f32 %v42_v11, %v42_v11 }
  0x99   :  { %v48_v14 = vsel %vm31_vm0, %v44_v13, 0.0 }
  0x9a   :  { %49 = vadd.xlane.f32.xlu1 %v48_v14 }
 0x11f   :  { %v47_v18 = vpop.xlane.xlu1 %46 }
 0x120   :  { %v51_v19 = vmul.f32 0.03125, %v47_v18 }
 0x122   :  { %v53_v20 = vadd.f32 1e-05, %v51_v19 }
 0x123   :  { %v50_v21 = vpop.xlane.xlu1 %49 }
 0x124   :  { %388 = vrsqrt.f32 %v53_v20  ;;  %v52_v22 = vmul.f32 0.03125, %v50_v21 }
 0x126   :  { %v54_v23 = vadd.f32 1e-05, %v52_v22 }
 0x128   :  { %390 = vrsqrt.f32 %v54_v23 }
 0x131   :  { %v389_v30 = vpop.eup %388 }
 0x132   :  { %v57_v31 = vmul.f32 %v389_v30, %v41_v7 }
 0x134   :  { %v65_v36 = vmul.f32 %v64_v32, %v57_v31 }
 0x135   :  { %v391_v34 = vpop.eup %390 }
 0x136   :  { %v58_v35 = vmul.f32 %v391_v34, %v42_v11  ;;  %v73_v39 = vadd.f32 %v72_v37, %v65_v36  ;;  %v186_v11 = vld [vmem:[%s520_s6] sm:$0x1] }
 0x137   :  { %v187_v12 = vunpack.c.l.bf16 %v186_v11 }
 0x138   :  { %v66_v38 = vmul.f32 %v64_v32, %v58_v35 }
 0x139   :  { %v191_v13 = vrot.slane %v187_v12, %v466_v28 }
 0x13a   :  { %v74_v40 = vadd.f32 %v72_v37, %v66_v38 }
 0x13c   :  { %v75_v41 = vpack.c.bf16 %v74_v40, %v73_v39 }
 0x13e   :  { %352 = vmatmul.mubr.msk.bf16.vlgmr.msra.gmra.mxu0 %vm31_vm0, %v75_v41 }
 0x1fe   :  { %v135_v53 = vpop.f32.mrf.mxu0 }
 0x1ff   :  { %v136_v54 = vadd.f32 %v135_v53, %v85_v52 }
 0x200   :  { %v353_v55 = vpop.f32.mrf.mxu0 }
 0x201   :  { %v307_v56 = vmul.f32 -1.702, %v136_v54 }
 0x202   :  { %v138_v57 = vpop.f32.mrf.mxu0 }
 0x203   :  { %v146_v58 = vmul.f32 1.442695, %v307_v56  ;;  %v139_v59 = vadd.f32 %v138_v57, %v85_v52 }
 0x204   :  { %v354_v60 = vpop.f32.mrf.mxu0 }
 0x205   :  { %392 = vpow2.f32 %v146_v58  ;;  %v308_v61 = vmul.f32 -1.702, %v139_v59 }
 0x207   :  { %v148_v62 = vmul.f32 1.442695, %v308_v61 }
 0x209   :  { %394 = vpow2.f32 %v148_v62 }
 0x212   :  { %v393_v63 = vpop.eup %392 }
 0x213   :  { %v150_v0 = vadd.f32 1.0, %v393_v63 }
 0x215   :  { %396 = vrcp.f32 %v150_v0 }
 0x216   :  { %v395_v3 = vpop.eup %394 }
 0x217   :  { %v151_v4 = vadd.f32 1.0, %v395_v3 }
 0x219   :  { %398 = vrcp.f32 %v151_v4 }
 0x222   :  { %v397_v5 = vpop.eup %396 }
 0x223   :  { %v156_v7 = vmul.f32 %v397_v5, %v136_v54 }
 0x226   :  { %v399_v6 = vpop.eup %398 }
 0x227   :  { %v157_v8 = vmul.f32 %v399_v6, %v139_v59 }
 0x229   :  { %v333_v9 = vpack.c.bf16 %v157_v8, %v156_v7 }
 0x22b   :  { %334 = vst [vmem:[#allocation2] sm:$0xff] %v333_v9  }
 0x232   :  { %v387_v10 = vld [vmem:[#allocation2] sm:$0xff]  }
 0x233   :  { %372 = vmatmul.mubr.bf16.vlgmr.msra.gmra.mxu1 %v387_v10 }
 0x2f3   :  { %v280_v14 = vpop.f32.mrf.mxu1 }
 0x2f4   :  { %v281_v15 = vadd.f32 %v280_v14, %v191_v13 }
 0x2f5   :  { %v373_v16 = vpop.f32.mrf.mxu1 }
 0x2f6   :  { %v287_v17 = vadd.f32 %v445_v1, %v281_v15 }
 0x2f7   :  { %v283_v18 = vpop.f32.mrf.mxu1 }
 0x2f8   :  { %v324_v19 = vpack.c.bf16 %v287_v17, %v287_v17  ;;  %v284_v20 = vadd.f32 %v283_v18, %v191_v13 }
 0x2f9   :  { %v374_v21 = vpop.f32.mrf.mxu1 }
 0x2fa   :  { %298 = vst.msk [vmem:[%s521_s7] sm:$0xf] %vm297_vm2, %v324_v19  ;;  %v288_v22 = vadd.f32 %v447_v2, %v284_v20 }
 0x2fc   :  { %v325_v23 = vpack.c.bf16 %v288_v22, %v288_v22 }
 0x2fe   :  { %299 = vst.msk [vmem:[%s521_s7 + $0x4] sm:$0xf] %vm297_vm2, %v325_v23 }

// kernel: text_encoder_forward.13
= control target key start
LH: loop header
LB: loop body
LE: loop exit
PB: predicated region body
PF: predicated region fallthrough
CT: control target
= control target key end

     0   :  { %vm20_vm0 = vcmask 261120   ;;  %v136_v8 = vmov 0.0   ;;  %vm137_vm1 = vmmov 0   ;;  %v37_v14 = vlaneseq  ;;  %s184_s0 = inlined_call_operand.vmem [shape: bf16[8,32], index: 0, kind: input, shape index: {}]   ;;  %s185_s3 = inlined_call_operand.vmem [shape: bf16[32,32], index: 3, kind: input, shape index: {}]   ;;  %s186_s1 = inlined_call_operand.vmem [shape: bf16[1,32], index: 1, kind: input, shape index: {}]   ;;  %s187_s2 = inlined_call_operand.vmem [shape: bf16[1,32], index: 2, kind: input, shape index: {}]   ;;  %s188_s4 = inlined_call_operand.vmem [shape: bf16[8,32], index: 4, kind: output, shape index: {}]  }
   0x1   :  { %v18_v0 = vld [vmem:[%s184_s0] sm:$0xf]  ;;  %122 = vmatprep.subr.bf16.mxu0 %v136_v8  ;;  %v132_v9 = vld [vmem:[%s185_s3 + $0x8] sm:$0xff]   ;;  %126 = vmatprep.mubr.msk.bf16.mxu0 %vm137_vm1, %v136_v8  ;;  %vm110_vm2 = vcmask 257024  }
   0x2   :  { %v19_v1 = vunpack.c.l.bf16 %v18_v0  ;;  %123 = vmatpush3.bf16.msra.mxu0 %v132_v9  ;;  %v133_v10 = vld [vmem:[%s185_s3] sm:$0xff]   ;;  %v38_v15 = vshrl.u32 %v37_v14, 7 }
   0x3   :  { %124 = vmatprep.subr.bf16.mxu0 %v136_v8  ;;  %v35_v16 = vld [vmem:[%s186_s1] sm:$0x1] }
   0x4   :  { %v21_v2 = vsel %vm20_vm0, %v19_v1, 0.0  ;;  %v42_v17 = vld [vmem:[%s187_s2] sm:$0x1]  ;;  %v36_v18 = vunpack.c.l.bf16 %v35_v16  ;;  %v39_v19 = vsub.s32 0, %v38_v15 }
   0x5   :  { %22 = vadd.xlane.f32.xlu0 %v21_v2  ;;  %v43_v20 = vunpack.c.l.bf16 %v42_v17 }
   0x6   :  { %125 = vmatpush3.bf16.msra.mxu0 %v133_v10  ;;  %v40_v21 = vrot.slane %v36_v18, %v39_v19 }
   0x7   :  { %v47_v24 = vrot.slane %v43_v20, %v39_v19 }
  0x8e   :  { %v23_v3 = vpop.xlane.xlu0 %22 }
  0x8f   :  { %v25_v4 = vmul.f32 0.03125, %v23_v3 }
  0x91   :  { %v26_v5 = vsub.f32 %v19_v1, %v25_v4 }
  0x93   :  { %v27_v6 = vmul.f32 %v26_v5, %v26_v5 }
  0x95   :  { %v28_v7 = vsel %vm20_vm0, %v27_v6, 0.0 }
  0x96   :  { %29 = vadd.xlane.f32.xlu0 %v28_v7 }
 0x11f   :  { %v30_v11 = vpop.xlane.xlu0 %29 }
 0x120   :  { %v31_v12 = vmul.f32 0.03125, %v30_v11 }
 0x122   :  { %v32_v13 = vadd.f32 1e-05, %v31_v12 }
 0x124   :  { %134 = vrsqrt.f32 %v32_v13 }
 0x131   :  { %v135_v22 = vpop.eup %134 }
 0x132   :  { %v34_v23 = vmul.f32 %v135_v22, %v26_v5 }
 0x134   :  { %v41_v25 = vmul.f32 %v40_v21, %v34_v23 }
 0x136   :  { %v48_v26 = vadd.f32 %v47_v24, %v41_v25 }
 0x138   :  { %v49_v27 = vpack.c.bf16 %v48_v26, %v48_v26 }
 0x13a   :  { %127 = vmatmul.mubr.msk.bf16.vlgmr.msra.gmra.mxu0 %vm20_vm0, %v49_v27 }
 0x1fa   :  { %v103_v28 = vpop.f32.mrf.mxu0 }
 0x1fb   :  { %v109_v29 = vpack.c.bf16 %v103_v28, %v103_v28 }
 0x1fc   :  { %v128_v30 = vpop.f32.mrf.mxu0 }
 0x1fd   :  { %111 = vst.msk [vmem:[%s188_s4] sm:$0xf] %vm110_vm2, %v109_v29 }
 0x1fe   :  { %v106_v31 = vpop.f32.mrf.mxu0 }
 0x200   :  { %v129_v32 = vpop.f32.mrf.mxu0 }

</bundles_post_ra>
